<compile_context>
chip_gen: v7x
topology: tpu7x:2x2x1
jax: 0.10.0
libtpu: 0.0.40
codegen_flags: <defaults>
</compile_context>

<pallas_src>
import jax
import jax.numpy as jnp
from jax.experimental import pallas as pl
from jax.experimental.pallas import tpu as pltpu

HIDDEN = 256


def _act_dtype_for_backend():
    """bf16 activations on chips with a bf16 VPU (v6e/v7x); f32 otherwise (v5e etc.)."""
    try:
        kind = jax.devices()[0].device_kind.lower()
    except Exception:
        return jnp.float32
    if "v6" in kind or "v7" in kind or "7x" in kind:
        return jnp.bfloat16
    return jnp.float32


def _round_up(x, m):
    return ((x + m - 1) // m) * m


def _vmem_bytes_estimate(tb, in_size, act_bytes):
    x_tile = 2 * tb * in_size * 4                                  # double-buffered f32 x tile
    weights = 2 * (in_size * HIDDEN + 2 * HIDDEN * HIDDEN) * 2     # bf16 W1/W2/W3 (double-buffered)
    slab = 2 * 8 * HIDDEN * 4                                      # bias/wfc slab (f32)
    out = 2 * 1 * tb * 4                                           # (1, tb) f32 logits tile
    acts = tb * HIDDEN * (4 + 3 * act_bytes)                       # f32 matmul result + h1/h2/h3
    return x_tile + weights + slab + out + acts


def _pick_tb(B, requested_tb, in_size, act_bytes):
    # >= 2 grid steps whenever the batch allows it (v7x has 2 TensorCores);
    # multiples of 128 for full MXU row fill.
    tb = max(128, min(_round_up(requested_tb, 128),
                      _round_up(pl.cdiv(B, 2), 128)))
    # Respect v7x's 64 MiB physical VMEM: keep the footprint well under it.
    while tb > 128 and _vmem_bytes_estimate(tb, in_size, act_bytes) > (40 << 20):
        tb -= 128
    return tb


def _make_kernel(act_dtype):
    def kernel(x_ref, w1_ref, w2_ref, w3_ref, slab_ref, bfc_ref, out_ref):
        # x_ref: (tb, in_size) f32; W*: bf16; slab_ref: (8, HIDDEN) f32 with
        #   rows 0=b1, 1=b2, 2=b3, 3=wfc; bfc_ref: (1, 1) f32 in SMEM.
        # out_ref: (1, tb) f32 lane-dense logits row for this batch tile.
        x = x_ref[...].astype(jnp.bfloat16)   # in-kernel cast (VPU, hidden under DMA/MXU slack)
        slab = slab_ref[...]
        b1, b2, b3 = slab[0:1, :], slab[1:2, :], slab[2:3, :]
        wfc_row = slab[3:4, :]                # f32 (1, HIDDEN)

        # mlp1: Linear(input_size, 256) + ReLU  (Dropout == identity in eval)
        d1 = jnp.dot(x, w1_ref[...], preferred_element_type=jnp.float32)
        h1 = jnp.maximum(d1 + b1, 0.0).astype(act_dtype)

        # mlp2 + residual (ReLU / residual add in act_dtype; bf16 on v6e/v7x)
        d2 = jnp.dot(h1.astype(jnp.bfloat16), w2_ref[...],
                     preferred_element_type=jnp.float32)
        h2 = jnp.maximum(d2 + b2, 0.0).astype(act_dtype) + h1

        # mlp3 + residual
        d3 = jnp.dot(h2.astype(jnp.bfloat16), w3_ref[...],
                     preferred_element_type=jnp.float32)
        h3 = jnp.maximum(d3 + b3, 0.0).astype(act_dtype) + h2

        # fc: Linear(256, 1) as a VPU multiply + lane reduction (an N=1 MXU pass
        # would use <1% of the array); f32 accumulate, fc bias from SMEM scalar.
        logits = jnp.sum(h3.astype(jnp.float32) * wfc_row, axis=1) + bfc_ref[0, 0]
        # (tb,) per-sublane column -> lane-dense (1, tb) row: one XLU relayout
        # per tile, amortized by the large tb.
        out_ref[...] = logits[None, :].astype(out_ref.dtype)

    return kernel


def prepare_params(params):
    """One-time packing/casting of the f32 torch-layout params for the kernel.

    params: (w1, b1, w2, b2, w3, b3, wfc, bfc) with Wi (in, out), bi (1, out),
    wfc (HIDDEN, 1), bfc (1, 1).  Returns (w1_bf, w2_bf, w3_bf, slab, bfc).
    """
    w1, b1, w2, b2, w3, b3, wfc, bfc = params
    slab = jnp.zeros((8, HIDDEN), jnp.float32)
    slab = slab.at[0].set(b1.reshape(HIDDEN))
    slab = slab.at[1].set(b2.reshape(HIDDEN))
    slab = slab.at[2].set(b3.reshape(HIDDEN))
    slab = slab.at[3].set(wfc.reshape(HIDDEN))
    return (w1.astype(jnp.bfloat16), w2.astype(jnp.bfloat16),
            w3.astype(jnp.bfloat16), slab, bfc.reshape(1, 1).astype(jnp.float32))


def mlp_for_filling_forward(x, params, y=None, *, tb=512, act_dtype=None):
    """Run MLPForFilling.forward.

    x: (B, input_size) f32.  params: raw 8-tuple from init_params() or the
    prepared 5-tuple from prepare_params() (preferred for repeated calls).
    Returns logits (B,) or the scalar MSE loss when y (shape (B,)) is given.
    """
    if len(params) == 8:
        params = prepare_params(params)
    w1_bf, w2_bf, w3_bf, slab, bfc = params

    B, in_size = x.shape
    if act_dtype is None:
        act_dtype = _act_dtype_for_backend()
    act_bytes = jnp.dtype(act_dtype).itemsize

    tb = _pick_tb(B, tb, in_size, act_bytes)
    num_tiles = pl.cdiv(B, tb)
    B_pad = num_tiles * tb
    if B_pad != B:
        # Padded rows compute garbage logits (finite: zero-padded x); sliced off below.
        x = jnp.pad(x, ((0, B_pad - B), (0, 0)))

    flops = 2 * B_pad * (in_size * HIDDEN + 2 * HIDDEN * HIDDEN + HIDDEN)
    bytes_accessed = (
        x.size * 4                                              # f32 x stream
        + (w1_bf.size + w2_bf.size + w3_bf.size) * 2            # bf16 weights
        + slab.size * 4 + 4                                     # bias slab + bfc
        + B_pad * 4                                             # logits row
    )

    vmem_bytes = int(1.5 * _vmem_bytes_estimate(tb, in_size, act_bytes)) + (2 << 20)
    vmem_bytes = min(max(vmem_bytes, 32 << 20), 48 << 20)       # stay under v7x's 64 MiB

    out = pl.pallas_call(
        _make_kernel(act_dtype),
        out_shape=jax.ShapeDtypeStruct((1, B_pad), jnp.float32),
        grid_spec=pltpu.PrefetchScalarGridSpec(
            num_scalar_prefetch=0,
            grid=(num_tiles,),
            in_specs=[
                pl.BlockSpec((tb, in_size), lambda i: (i, 0)),       # x tile (f32)
                pl.BlockSpec((in_size, HIDDEN), lambda i: (0, 0)),   # W1 (bf16, resident)
                pl.BlockSpec((HIDDEN, HIDDEN), lambda i: (0, 0)),    # W2 (bf16, resident)
                pl.BlockSpec((HIDDEN, HIDDEN), lambda i: (0, 0)),    # W3 (bf16, resident)
                pl.BlockSpec((8, HIDDEN), lambda i: (0, 0)),         # b1/b2/b3/wfc slab (f32)
                pl.BlockSpec(memory_space=pltpu.MemorySpace.SMEM),   # bfc scalar
            ],
            out_specs=pl.BlockSpec((1, tb), lambda i: (0, i)),       # lane-dense logits row
        ),
        compiler_params=pltpu.CompilerParams(
            dimension_semantics=("parallel",),
            vmem_limit_bytes=vmem_bytes),
        cost_estimate=pl.CostEstimate(
            flops=flops, transcendentals=0, bytes_accessed=bytes_accessed),
    )(x, w1_bf, w2_bf, w3_bf, slab, bfc)

    logits = out[0, :B]
    if y is not None:
        return jnp.mean((logits - y) ** 2)   # nn.MSELoss()
    return logits


def init_params(key, input_size):
    """Deterministic init matching nn.Linear default (uniform +/- 1/sqrt(fan_in))."""
    ks = jax.random.split(key, 8)

    def linear(kw, kb, fan_in, fan_out):
        bound = 1.0 / jnp.sqrt(fan_in)
        w = jax.random.uniform(kw, (fan_in, fan_out), jnp.float32, -bound, bound)
        b = jax.random.uniform(kb, (1, fan_out), jnp.float32, -bound, bound)
        return w, b

    w1, b1 = linear(ks[0], ks[1], input_size, HIDDEN)
    w2, b2 = linear(ks[2], ks[3], HIDDEN, HIDDEN)
    w3, b3 = linear(ks[4], ks[5], HIDDEN, HIDDEN)
    wfc, bfc = linear(ks[6], ks[7], HIDDEN, 1)
    return (w1, b1, w2, b2, w3, b3, wfc, bfc)


def _reference_forward(x, params, y=None):
    w1, b1, w2, b2, w3, b3, wfc, bfc = params
    h1 = jnp.maximum(x @ w1 + b1, 0.0)
    h2 = jnp.maximum(h1 @ w2 + b2, 0.0) + h1
    h3 = jnp.maximum(h2 @ w3 + b3, 0.0) + h2
    logits = (h3 @ wfc + bfc)[:, 0]
    if y is not None:
        return jnp.mean((logits - y) ** 2)
    return logits


if __name__ == "__main__":
    key = jax.random.PRNGKey(0)
    k_x, k_y, k_p = jax.random.split(key, 3)

    B, INPUT_SIZE = 8, 32
    x = jax.random.normal(k_x, (B, INPUT_SIZE), jnp.float32)
    y = jax.random.normal(k_y, (B,), jnp.float32)
    params = init_params(k_p, INPUT_SIZE)
    packed = prepare_params(params)   # one-time bf16 weight cast + bias packing

    # inference path (y=None)
    logits = mlp_for_filling_forward(x, packed)
    jax.block_until_ready(logits)

    # loss path (y given)
    loss = mlp_for_filling_forward(x, packed, y)
    jax.block_until_ready(loss)

    # correctness check against pure-JAX f32 reference (tolerance covers bf16
    # matmul inputs and, on v6e/v7x, bf16 hidden activations; accumulation f32).
    ref_logits = _reference_forward(x, params)
    ref_loss = _reference_forward(x, params, y)
    assert logits.shape == (B,)
    assert jnp.allclose(logits, ref_logits, atol=1e-1, rtol=1e-1), (logits, ref_logits)
    assert jnp.allclose(loss, ref_loss, atol=1e-1, rtol=1e-1), (loss, ref_loss)

    print("KERNEL_OK")
</pallas_src>

<mosaic_0001>
module attributes {stable_mosaic.version = 11 : i64} {
  func.func @kernel(%arg0: i32, %arg1: memref<128x32xf32, #tpu.memory_space<vmem>>, %arg2: memref<32x256xbf16, #tpu.memory_space<vmem>>, %arg3: memref<256x256xbf16, #tpu.memory_space<vmem>>, %arg4: memref<256x256xbf16, #tpu.memory_space<vmem>>, %arg5: memref<8x256xf32, #tpu.memory_space<vmem>>, %arg6: memref<1x1xf32, #tpu.memory_space<smem>>, %arg7: memref<1x128xf32, #tpu.memory_space<vmem>>) attributes {dimension_semantics = [#tpu.dimension_semantics<parallel>], iteration_bounds = array<i64: 1>, scalar_prefetch = 0 : i64, scratch_operands = 0 : i64, tpu.core_type = #tpu.core_type<tc>, window_params = [{transform_indices = @transform_0, window_bounds = array<i64: 128, 32>}, {pipeline_mode = #tpu.pipeline_mode<synchronous>, transform_indices = @transform_1, window_bounds = array<i64: 32, 256>}, {pipeline_mode = #tpu.pipeline_mode<synchronous>, transform_indices = @transform_2, window_bounds = array<i64: 256, 256>}, {pipeline_mode = #tpu.pipeline_mode<synchronous>, transform_indices = @transform_3, window_bounds = array<i64: 256, 256>}, {pipeline_mode = #tpu.pipeline_mode<synchronous>, transform_indices = @transform_4, window_bounds = array<i64: 8, 256>}, {transform_indices = @transform_5, window_bounds = array<i64: 1, 1>}, {transform_indices = @transform_6, window_bounds = array<i64: 1, 128>}]} {
    %c0 = arith.constant 0 : index
    %c0_0 = arith.constant 0 : index
    %0 = vector.load %arg1[%c0, %c0_0] : memref<128x32xf32, #tpu.memory_space<vmem>>, vector<128x32xf32>
    %1 = arith.truncf %0 : vector<128x32xf32> to vector<128x32xbf16>
    %c0_1 = arith.constant 0 : index
    %c0_2 = arith.constant 0 : index
    %2 = vector.load %arg5[%c0_1, %c0_2] : memref<8x256xf32, #tpu.memory_space<vmem>>, vector<8x256xf32>
    %3 = vector.extract_strided_slice %2 {offsets = [0, 0], sizes = [1, 256], strides = [1, 1]} : vector<8x256xf32> to vector<1x256xf32>
    %4 = vector.extract_strided_slice %2 {offsets = [1, 0], sizes = [1, 256], strides = [1, 1]} : vector<8x256xf32> to vector<1x256xf32>
    %5 = vector.extract_strided_slice %2 {offsets = [2, 0], sizes = [1, 256], strides = [1, 1]} : vector<8x256xf32> to vector<1x256xf32>
    %6 = vector.extract_strided_slice %2 {offsets = [3, 0], sizes = [1, 256], strides = [1, 1]} : vector<8x256xf32> to vector<1x256xf32>
    %c0_3 = arith.constant 0 : index
    %c0_4 = arith.constant 0 : index
    %7 = vector.load %arg2[%c0_3, %c0_4] : memref<32x256xbf16, #tpu.memory_space<vmem>>, vector<32x256xbf16>
    %cst = arith.constant dense<0.000000e+00> : vector<128x256xf32>
    %8 = tpu.matmul %1, %7, %cst {dimension_numbers = #tpu.dot_dimension_numbers<[1], [0], [0], [1], [0, 0, 1, 1], [], []>} : vector<128x32xbf16>, vector<32x256xbf16>, vector<128x256xf32> -> vector<128x256xf32>
    %9 = vector.broadcast %3 : vector<1x256xf32> to vector<128x256xf32>
    %10 = arith.addf %8, %9 : vector<128x256xf32>
    %cst_5 = arith.constant 0.000000e+00 : f32
    %11 = vector.broadcast %cst_5 : f32 to vector<128x256xf32>
    %12 = arith.maximumf %10, %11 : vector<128x256xf32>
    %13 = arith.truncf %12 : vector<128x256xf32> to vector<128x256xbf16>
    %c0_6 = arith.constant 0 : index
    %c0_7 = arith.constant 0 : index
    %14 = vector.load %arg3[%c0_6, %c0_7] : memref<256x256xbf16, #tpu.memory_space<vmem>>, vector<256x256xbf16>
    %cst_8 = arith.constant dense<0.000000e+00> : vector<128x256xf32>
    %15 = tpu.matmul %13, %14, %cst_8 {dimension_numbers = #tpu.dot_dimension_numbers<[1], [0], [0], [1], [0, 0, 1, 1], [], []>} : vector<128x256xbf16>, vector<256x256xbf16>, vector<128x256xf32> -> vector<128x256xf32>
    %16 = vector.broadcast %4 : vector<1x256xf32> to vector<128x256xf32>
    %17 = arith.addf %15, %16 : vector<128x256xf32>
    %cst_9 = arith.constant 0.000000e+00 : f32
    %18 = vector.broadcast %cst_9 : f32 to vector<128x256xf32>
    %19 = arith.maximumf %17, %18 : vector<128x256xf32>
    %20 = arith.addf %19, %12 : vector<128x256xf32>
    %21 = arith.truncf %20 : vector<128x256xf32> to vector<128x256xbf16>
    %c0_10 = arith.constant 0 : index
    %c0_11 = arith.constant 0 : index
    %22 = vector.load %arg4[%c0_10, %c0_11] : memref<256x256xbf16, #tpu.memory_space<vmem>>, vector<256x256xbf16>
    %cst_12 = arith.constant dense<0.000000e+00> : vector<128x256xf32>
    %23 = tpu.matmul %21, %22, %cst_12 {dimension_numbers = #tpu.dot_dimension_numbers<[1], [0], [0], [1], [0, 0, 1, 1], [], []>} : vector<128x256xbf16>, vector<256x256xbf16>, vector<128x256xf32> -> vector<128x256xf32>
    %24 = vector.broadcast %5 : vector<1x256xf32> to vector<128x256xf32>
    %25 = arith.addf %23, %24 : vector<128x256xf32>
    %cst_13 = arith.constant 0.000000e+00 : f32
    %26 = vector.broadcast %cst_13 : f32 to vector<128x256xf32>
    %27 = arith.maximumf %25, %26 : vector<128x256xf32>
    %28 = arith.addf %27, %20 : vector<128x256xf32>
    %29 = vector.broadcast %6 : vector<1x256xf32> to vector<128x256xf32>
    %30 = arith.mulf %28, %29 : vector<128x256xf32>
    %cst_14 = arith.constant dense<0.000000e+00> : vector<128xf32>
    %31 = vector.multi_reduction <add>, %30, %cst_14 [1] : vector<128x256xf32> to vector<128xf32>
    %c0_15 = arith.constant 0 : index
    %c0_16 = arith.constant 0 : index
    %32 = memref.load %arg6[%c0_15, %c0_16] : memref<1x1xf32, #tpu.memory_space<smem>>
    %33 = vector.broadcast %32 : f32 to vector<128xf32>
    %34 = arith.addf %31, %33 : vector<128xf32>
    %35 = vector.shape_cast %34 : vector<128xf32> to vector<1x128xf32>
    %c0_17 = arith.constant 0 : index
    %c0_18 = arith.constant 0 : index
    %36 = vector.load %arg7[%c0_17, %c0_18] : memref<1x128xf32, #tpu.memory_space<vmem>>, vector<1x128xf32>
    tpu.vector_store %arg7[%c0_17, %c0_18], %35 {strides = array<i32>} : memref<1x128xf32, #tpu.memory_space<vmem>>, vector<1x128xf32>,
    return
  }
  func.func @transform_0(%arg0: i32) -> (i32, i32) {
    %c0_i32 = arith.constant 0 : i32
    %c0_i32_0 = arith.constant 0 : i32
    return %arg0, %c0_i32 : i32, i32
  }
  func.func @transform_1(%arg0: i32) -> (i32, i32) {
    %c0_i32 = arith.constant 0 : i32
    %c0_i32_0 = arith.constant 0 : i32
    %c0_i32_1 = arith.constant 0 : i32
    return %c0_i32, %c0_i32_0 : i32, i32
  }
  func.func @transform_2(%arg0: i32) -> (i32, i32) {
    %c0_i32 = arith.constant 0 : i32
    %c0_i32_0 = arith.constant 0 : i32
    %c0_i32_1 = arith.constant 0 : i32
    return %c0_i32, %c0_i32_0 : i32, i32
  }
  func.func @transform_3(%arg0: i32) -> (i32, i32) {
    %c0_i32 = arith.constant 0 : i32
    %c0_i32_0 = arith.constant 0 : i32
    %c0_i32_1 = arith.constant 0 : i32
    return %c0_i32, %c0_i32_0 : i32, i32
  }
  func.func @transform_4(%arg0: i32) -> (i32, i32) {
    %c0_i32 = arith.constant 0 : i32
    %c0_i32_0 = arith.constant 0 : i32
    %c0_i32_1 = arith.constant 0 : i32
    return %c0_i32, %c0_i32_0 : i32, i32
  }
  func.func @transform_5(%arg0: i32) -> (i32, i32) {
    %c0_i32 = arith.constant 0 : i32
    %c0_i32_0 = arith.constant 0 : i32
    %c0_i32_1 = arith.constant 0 : i32
    return %c0_i32, %c0_i32_0 : i32, i32
  }
  func.func @transform_6(%arg0: i32) -> (i32, i32) {
    %c0_i32 = arith.constant 0 : i32
    %c0_i32_0 = arith.constant 0 : i32
    return %c0_i32, %arg0 : i32, i32
  }
}

</mosaic_0001>

<bundles_post_ra>
// kernel: tpu_custom_call.1
= control target key start
LH: loop header
LB: loop body
LE: loop exit
PB: predicated region body
PF: predicated region fallthrough
CT: control target
= control target key end

     0   :  { %12 = vsyncpa [#allocation4], 0  ;;  %s2309_s0 = inlined_call_operand.vmem [shape: f32[128,32], index: 0, kind: input, shape index: {}]   ;;  %s2310_s1 = inlined_call_operand.vmem [shape: bf16[32,256], index: 1, kind: input, shape index: {}]   ;;  %s2311_s2 = inlined_call_operand.hbm [shape: bf16[256,256], index: 2, kind: input, shape index: {}]   ;;  %s2312_s3 = inlined_call_operand.hbm [shape: bf16[256,256], index: 3, kind: input, shape index: {}]   ;;  %s2313_s4 = inlined_call_operand.vmem [shape: f32[8,256], index: 4, kind: input, shape index: {}]   ;;  %s2314_s5 = inlined_call_operand.<no memory space> [shape: f32[1,1], index: 5, kind: input, shape index: {}]   ;;  %s2315_s6 = inlined_call_operand.hbm [shape: f32[1,128], index: 6, kind: output, shape index: {}]  }
   0x1   :  { %13 = vsyncpa [#allocation7], 0 }
   0x2   :  { %14 = vsyncpa [#allocation5], 0  ;;  %s1575_s21 = smov [#allocation3]   ;;  %s1503_s25 = scalar_lea.hbm %s2311_s2, 4096 }
   0x3   :  { %s24_s22 = sshll.u32 %s1575_s21, 4  ;;  %p1504_p0 = scmp.ne.s32.totalorder %s2311_s2, %s1503_s25  ;;  %s25_s22 = int_to_ptr.vmem [resolvable:$true] %s24_s22 }
   0x4   :  { %p1507_p1 = scmp.lt.u32.totalorder %s1503_s25, %s2311_s2 }
   0x6   :  { %p1509_p2 = pnand %p1507_p1, %p1504_p0 }
   0x8   :  { %1512 = shalt.err (!%p1509_p2)
}
   0x9   :  { %s1513_s30 = scalar_lea.vmem %s25_s22, 4096  ;;  %p1518_p4 = scmp.lt.s32.totalorder %s25_s22, %s25_s22 }
   0xa   :  { %p1514_p3 = scmp.ne.s32.totalorder %s25_s22, %s1513_s30  ;;  %p1519_p5 = scmp.lt.s32.totalorder %s1513_s30, %s1513_s30 }
   0xc   :  { %p1520_p6 = por %p1519_p5, %p1518_p4 }
   0xe   :  { %p1521_p7 = pnand %p1520_p6, %p1514_p3 }
  0x10   :  { %1524 = shalt.err (!%p1521_p7)
}
  0x11   :  { %s1576_s7 = smov 128   ;;  %s1577_s8 = smov 8  }
  0x12   :  { %30 = dma.hbm_to_vmem [thread:$0]  %s2311_s2, 4096, %s25_s22, [#allocation4], %s1576_s7, %s1576_s7, %s1577_s8  }
  0x13   :  { %s1578_s11 = smov [#allocation6]   ;;  %s1525_s15 = scalar_lea.hbm %s2312_s3, 4096 }
  0x14   :  { %s36_s12 = sshll.u32 %s1578_s11, 4  ;;  %p1526_p8 = scmp.ne.s32.totalorder %s2312_s3, %s1525_s15  ;;  %s37_s12 = int_to_ptr.vmem [resolvable:$true] %s36_s12 }
  0x15   :  { %p1529_p9 = scmp.lt.u32.totalorder %s1525_s15, %s2312_s3 }
  0x17   :  { %p1531_p10 = pnand %p1529_p9, %p1526_p8 }
  0x19   :  { %1534 = shalt.err (!%p1531_p10)
}
  0x1a   :  { %s1535_s20 = scalar_lea.vmem %s37_s12, 4096  ;;  %p1540_p12 = scmp.lt.s32.totalorder %s37_s12, %s37_s12 }
  0x1b   :  { %p1536_p11 = scmp.ne.s32.totalorder %s37_s12, %s1535_s20  ;;  %p1541_p13 = scmp.lt.s32.totalorder %s1535_s20, %s1535_s20 }
  0x1d   :  { %p1542_p0 = por %p1541_p13, %p1540_p12 }
  0x1f   :  { %p1543_p1 = pnand %p1542_p0, %p1536_p11 }
  0x21   :  { %1546 = shalt.err (!%p1543_p1)
}
  0x22   :  { %42 = dma.hbm_to_vmem [thread:$0]  %s2312_s3, 4096, %s37_s12, [#allocation7], %s1576_s7, %s1576_s7, %s1577_s8  }
  0x23   :  { %1569 = dma.done.wait [#allocation4], 4096  }
  0x24   :  { %1570 = vsyncadd [#allocation4], 4294963200 }
  0x25   :  { %1571 = dma.done.wait [#allocation7], 4096  }
  0x26   :  { %1572 = vsyncadd [#allocation7], 4294963200  ;;  %v1579_v0 = vmov 0   ;;  %v1401_v1 = vld [vmem:[%s2310_s1 + $0x4] ss:$8 sps:$4 sm:$0xff]   ;;  %vm112_vm0 = vcmask 261120  }
  0x27   :  { %169 = vmatprep.mubr.bf16.mxu0 %v1579_v0  ;;  %v1403_v2 = vld [vmem:[%s2310_s1] ss:$8 sps:$4 sm:$0xff]   ;;  %137 = vmatprep.subr.bf16.mxu0 %v1401_v1  ;;  %v1404_v3 = vld [vmem:[%s2310_s1 + $0x14] ss:$8 sps:$4 sm:$0xff]   ;;  %v1406_v4 = vld [vmem:[%s2310_s1 + $0x10] ss:$8 sps:$4 sm:$0xff]  }
  0x28   :  { %138 = vmatpush1.bf16.msra.mxu0 %v1403_v2  ;;  %v54_v5 = vld [vmem:[%s2309_s0] sm:$0xff]  ;;  %v55_v6 = vld [vmem:[%s2309_s0 + $0x8] sm:$0xff]  ;;  %v56_v10 = vld [vmem:[%s2309_s0 + $0x10] sm:$0xff]  ;;  %vm1201_vm1 = vcmask 130112   ;;  %vm1208_vm2 = vcmask 195712   ;;  %vm1215_vm3 = vcmask 261312  }
  0x29   :  { %139 = vmatprep.subr.bf16.mxu0 %v1404_v3  ;;  %v70_v7 = vpack.c.bf16 %v55_v6, %v54_v5  ;;  %v1407_v8 = vld [vmem:[#allocation3 + $0x4] ss:$8 sps:$4 sm:$0xff]   ;;  %v1409_v9 = vld [vmem:[#allocation3] ss:$8 sps:$4 sm:$0xff]   ;;  %v1410_v11 = vld [vmem:[#allocation3 + $0x14] ss:$8 sps:$4 sm:$0xff]  }
  0x2a   :  { %498 = vmatprep.subr.bf16.mxu1 %v1407_v8  ;;  %v57_v12 = vld [vmem:[%s2309_s0 + $0x18] sm:$0xff]  ;;  %v1413_v14 = vld [vmem:[#allocation3 + $0x24] ss:$8 sps:$4 sm:$0xff]   ;;  %v1415_v16 = vld [vmem:[#allocation3 + $0x20] ss:$8 sps:$4 sm:$0xff]   ;;  %vm1222_vm4 = vcmask 326912  }
  0x2b   :  { %499 = vmatpush1.bf16.msra.mxu1 %v1409_v9  ;;  %v1412_v13 = vld [vmem:[#allocation3 + $0x10] ss:$8 sps:$4 sm:$0xff]   ;;  %v71_v15 = vpack.c.bf16 %v57_v12, %v56_v10  ;;  %v1416_v17 = vld [vmem:[#allocation3 + $0x34] ss:$8 sps:$4 sm:$0xff]   ;;  %v58_v18 = vld [vmem:[%s2309_s0 + $0x20] sm:$0xff]  ;;  %vm1229_vm5 = vcmask 392512  }
  0x2c   :  { %140 = vmatpush1.bf16.msra.mxu0 %v1406_v4  ;;  %500 = vmatprep.subr.bf16.mxu1 %v1410_v11  ;;  %v59_v19 = vld [vmem:[%s2309_s0 + $0x28] sm:$0xff]  ;;  %v1418_v20 = vld [vmem:[#allocation3 + $0x30] ss:$8 sps:$4 sm:$0xff]   ;;  %v1422_v24 = vld [vmem:[#allocation3 + $0x54] ss:$8 sps:$4 sm:$0xff]   ;;  %vm1236_vm6 = vcmask 458112  }
  0x2d   :  { %v1419_v21 = vld [vmem:[#allocation3 + $0x44] ss:$8 sps:$4 sm:$0xff]   ;;  %v72_v22 = vpack.c.bf16 %v59_v19, %v58_v18  ;;  %v1421_v23 = vld [vmem:[#allocation3 + $0x40] ss:$8 sps:$4 sm:$0xff]   ;;  %v60_v25 = vld [vmem:[%s2309_s0 + $0x30] sm:$0xff]  ;;  %vm1243_vm7 = vcmask 523712  }
  0x2e   :  { %v61_v26 = vld [vmem:[%s2309_s0 + $0x38] sm:$0xff]  ;;  %v1425_v28 = vld [vmem:[#allocation3 + $0x64] ss:$8 sps:$4 sm:$0xff]   ;;  %v1427_v29 = vld [vmem:[#allocation3 + $0x60] ss:$8 sps:$4 sm:$0xff]   ;;  %vm1250_vm8 = vcmask 589312  }
  0x2f   :  { %1323 = vmatmul.mubr.msk.bf16.vlgmr.msra.gmra.mrb[0].mxu0 %vm112_vm0, %v70_v7  ;;  %501 = vmatpush1.bf16.msra.mxu1 %v1412_v13  ;;  %v1424_v27 = vld [vmem:[#allocation3 + $0x50] ss:$8 sps:$4 sm:$0xff]   ;;  %v73_v30 = vpack.c.bf16 %v61_v26, %v60_v25  ;;  %v1428_v31 = vld [vmem:[#allocation3 + $0x74] ss:$8 sps:$4 sm:$0xff]   ;;  %v62_v32 = vld [vmem:[%s2309_s0 + $0x40] sm:$0xff]  ;;  %vm1257_vm9 = vcmask 654912  }
  0x30   :  { %179 = vmatprep.mubr.bf16.mxu0 %v1579_v0  ;;  %502 = vmatprep.subr.bf16.mxu1 %v1413_v14  ;;  %v63_v33 = vld [vmem:[%s2309_s0 + $0x48] sm:$0xff]  ;;  %v1430_v34 = vld [vmem:[#allocation3 + $0x70] ss:$8 sps:$4 sm:$0xff]   ;;  %v1434_v38 = vld [vmem:[#allocation3 + $0x94] ss:$8 sps:$4 sm:$0xff]   ;;  %vm1264_vm10 = vcmask 720512  }
  0x31   :  { %v1431_v35 = vld [vmem:[#allocation3 + $0x84] ss:$8 sps:$4 sm:$0xff]   ;;  %v74_v36 = vpack.c.bf16 %v63_v33, %v62_v32  ;;  %v1433_v37 = vld [vmem:[#allocation3 + $0x80] ss:$8 sps:$4 sm:$0xff]   ;;  %v64_v39 = vld [vmem:[%s2309_s0 + $0x50] sm:$0xff]  ;;  %vm1271_vm11 = vcmask 786112  }
  0x32   :  { %v65_v40 = vld [vmem:[%s2309_s0 + $0x58] sm:$0xff]  ;;  %v1437_v42 = vld [vmem:[#allocation3 + $0xa4] ss:$8 sps:$4 sm:$0xff]   ;;  %v1439_v44 = vld [vmem:[#allocation3 + $0xa0] ss:$8 sps:$4 sm:$0xff]   ;;  %vm1278_vm12 = vcmask 851712  }
  0x33   :  { %503 = vmatpush1.bf16.msra.mxu1 %v1415_v16  ;;  %v1436_v41 = vld [vmem:[#allocation3 + $0x90] ss:$8 sps:$4 sm:$0xff]   ;;  %v75_v43 = vpack.c.bf16 %v65_v40, %v64_v39  ;;  %v1440_v45 = vld [vmem:[#allocation3 + $0xb4] ss:$8 sps:$4 sm:$0xff]   ;;  %v66_v46 = vld [vmem:[%s2309_s0 + $0x60] sm:$0xff]  ;;  %vm1285_vm13 = vcmask 917312  }
  0x34   :  { %504 = vmatprep.subr.bf16.mxu1 %v1416_v17  ;;  %v67_v47 = vld [vmem:[%s2309_s0 + $0x68] sm:$0xff]  ;;  %v1442_v48 = vld [vmem:[#allocation3 + $0xb0] ss:$8 sps:$4 sm:$0xff]   ;;  %v1446_v52 = vld [vmem:[#allocation3 + $0xd4] ss:$8 sps:$4 sm:$0xff]   ;;  %vm1292_vm14 = vcmask 982912  }
  0x35   :  { %v1443_v49 = vld [vmem:[#allocation3 + $0xc4] ss:$8 sps:$4 sm:$0xff]   ;;  %v76_v50 = vpack.c.bf16 %v67_v47, %v66_v46  ;;  %v1445_v51 = vld [vmem:[#allocation3 + $0xc0] ss:$8 sps:$4 sm:$0xff]   ;;  %v68_v53 = vld [vmem:[%s2309_s0 + $0x70] sm:$0xff]  ;;  %vm1299_vm15 = vcmask 1048512  }
  0x36   :  { %v69_v54 = vld [vmem:[%s2309_s0 + $0x78] sm:$0xff]  ;;  %v1449_v57 = vld [vmem:[#allocation3 + $0xe4] ss:$8 sps:$4 sm:$0xff]   ;;  %v1451_v58 = vld [vmem:[#allocation3 + $0xe0] ss:$8 sps:$4 sm:$0xff]  }
  0x37   :  { %1324 = vmatmul.mubr.msk.bf16.gmra.mrb[4].mxu0 %vm112_vm0, %v71_v15  ;;  %505 = vmatpush1.bf16.msra.mxu1 %v1418_v20  ;;  %v77_v55 = vpack.c.bf16 %v69_v54, %v68_v53  ;;  %v1448_v56 = vld [vmem:[#allocation3 + $0xd0] ss:$8 sps:$4 sm:$0xff]   ;;  %v1452_v59 = vld [vmem:[#allocation3 + $0xf4] ss:$8 sps:$4 sm:$0xff]   ;;  %v1455_v61 = vld [vmem:[#allocation6] ss:$8 sps:$4 sm:$0xff]  }
  0x38   :  { %189 = vmatprep.mubr.bf16.mxu0 %v1579_v0  ;;  %506 = vmatprep.subr.bf16.mxu1 %v1419_v21  ;;  %v1454_v60 = vld [vmem:[#allocation3 + $0xf0] ss:$8 sps:$4 sm:$0xff]   ;;  %v1457_v62 = vld [vmem:[#allocation6 + $0x4] ss:$8 sps:$4 sm:$0xff]   ;;  %v1460_v63 = vld [vmem:[#allocation6 + $0x14] ss:$8 sps:$4 sm:$0xff]  }
  0x39   :  { %891 = vmatprep.subr.bf16.mxu0 %v1457_v62  ;;  %v1463_v1 = vld [vmem:[#allocation6 + $0x24] ss:$8 sps:$4 sm:$0xff]   ;;  %v1461_v2 = vld [vmem:[#allocation6 + $0x20] ss:$8 sps:$4 sm:$0xff]   ;;  %v1466_v3 = vld [vmem:[#allocation6 + $0x34] ss:$8 sps:$4 sm:$0xff]  }
  0x3a   :  { %892 = vmatpush1.bf16.msra.mxu0 %v1455_v61  ;;  %v1464_v4 = vld [vmem:[#allocation6 + $0x30] ss:$8 sps:$4 sm:$0xff]   ;;  %v1469_v5 = vld [vmem:[#allocation6 + $0x44] ss:$8 sps:$4 sm:$0xff]   ;;  %v1467_v6 = vld [vmem:[#allocation6 + $0x40] ss:$8 sps:$4 sm:$0xff]  }
  0x3b   :  { %507 = vmatpush1.bf16.msra.mxu1 %v1421_v23  ;;  %893 = vmatprep.subr.bf16.mxu0 %v1460_v63  ;;  %v1472_v7 = vld [vmem:[#allocation6 + $0x54] ss:$8 sps:$4 sm:$0xff]   ;;  %v1470_v8 = vld [vmem:[#allocation6 + $0x50] ss:$8 sps:$4 sm:$0xff]   ;;  %v1475_v9 = vld [vmem:[#allocation6 + $0x64] ss:$8 sps:$4 sm:$0xff]  }
  0x3c   :  { %508 = vmatprep.subr.bf16.mxu1 %v1422_v24  ;;  %v1473_v10 = vld [vmem:[#allocation6 + $0x60] ss:$8 sps:$4 sm:$0xff]   ;;  %v1478_v11 = vld [vmem:[#allocation6 + $0x74] ss:$8 sps:$4 sm:$0xff]   ;;  %v1476_v12 = vld [vmem:[#allocation6 + $0x70] ss:$8 sps:$4 sm:$0xff]  }
  0x3d   :  { %v1481_v13 = vld [vmem:[#allocation6 + $0x84] ss:$8 sps:$4 sm:$0xff]   ;;  %v1479_v14 = vld [vmem:[#allocation6 + $0x80] ss:$8 sps:$4 sm:$0xff]   ;;  %v1484_v15 = vld [vmem:[#allocation6 + $0x94] ss:$8 sps:$4 sm:$0xff]  }
  0x3e   :  { %v1482_v16 = vld [vmem:[#allocation6 + $0x90] ss:$8 sps:$4 sm:$0xff]   ;;  %v1487_v17 = vld [vmem:[#allocation6 + $0xa4] ss:$8 sps:$4 sm:$0xff]   ;;  %v1485_v18 = vld [vmem:[#allocation6 + $0xa0] ss:$8 sps:$4 sm:$0xff]  }
  0x3f   :  { %1325 = vmatmul.mubr.msk.bf16.gmra.mrb[8].mxu0 %vm112_vm0, %v72_v22  ;;  %509 = vmatpush1.bf16.msra.mxu1 %v1424_v27  ;;  %v1490_v19 = vld [vmem:[#allocation6 + $0xb4] ss:$8 sps:$4 sm:$0xff]   ;;  %v1488_v20 = vld [vmem:[#allocation6 + $0xb0] ss:$8 sps:$4 sm:$0xff]   ;;  %v1493_v21 = vld [vmem:[#allocation6 + $0xc4] ss:$8 sps:$4 sm:$0xff]   ;;  %v2316_v22 = vlaneseq }
  0x40   :  { %199 = vmatprep.mubr.bf16.mxu0 %v1579_v0  ;;  %510 = vmatprep.subr.bf16.mxu1 %v1425_v28  ;;  %v1491_v23 = vld [vmem:[#allocation6 + $0xc0] ss:$8 sps:$4 sm:$0xff]  }
  0x41   :  { %v1717_v24 = vshrl.u32 %v2316_v22, 7  ;;  %v1723_v26 = vld [vmem:[%s2313_s4 + $0x8] sm:$0xff]  ;;  %v1728_v27 = vld [vmem:[%s2313_s4] sm:$0xff] }
  0x43   :  { %511 = vmatpush1.bf16.msra.mxu1 %v1427_v29  ;;  %v86_v25 = vsub.s32 0, %v1717_v24 }
  0x44   :  { %512 = vmatprep.subr.bf16.mxu1 %v1428_v31 }
  0x45   :  { %v1731_v28 = vrot.slane %v1723_v26, %v86_v25  ;;  %v1734_v29 = vrot.slane %v1728_v27, %v86_v25 }
  0x47   :  { %1326 = vmatmul.mubr.msk.bf16.gmra.mrb[12].mxu0 %vm112_vm0, %v73_v30  ;;  %513 = vmatpush1.bf16.msra.mxu1 %v1430_v34 }
  0x48   :  { %209 = vmatprep.mubr.bf16.mxu0 %v1579_v0  ;;  %514 = vmatprep.subr.bf16.mxu1 %v1431_v35 }
  0x4b   :  { %515 = vmatpush1.bf16.msra.mxu1 %v1433_v37 }
  0x4c   :  { %516 = vmatprep.subr.bf16.mxu1 %v1434_v38 }
  0x4f   :  { %1327 = vmatmul.mubr.msk.bf16.gmra.mrb[16].mxu0 %vm112_vm0, %v74_v36  ;;  %517 = vmatpush1.bf16.msra.mxu1 %v1436_v41 }
  0x50   :  { %219 = vmatprep.mubr.bf16.mxu0 %v1579_v0  ;;  %518 = vmatprep.subr.bf16.mxu1 %v1437_v42 }
  0x53   :  { %519 = vmatpush1.bf16.msra.mxu1 %v1439_v44 }
  0x54   :  { %520 = vmatprep.subr.bf16.mxu1 %v1440_v45 }
  0x57   :  { %1328 = vmatmul.mubr.msk.bf16.gmra.mrb[20].mxu0 %vm112_vm0, %v75_v43  ;;  %521 = vmatpush1.bf16.msra.mxu1 %v1442_v48 }
  0x58   :  { %229 = vmatprep.mubr.bf16.mxu0 %v1579_v0  ;;  %522 = vmatprep.subr.bf16.mxu1 %v1443_v49 }
  0x5b   :  { %523 = vmatpush1.bf16.msra.mxu1 %v1445_v51 }
  0x5c   :  { %524 = vmatprep.subr.bf16.mxu1 %v1446_v52 }
  0x5f   :  { %1329 = vmatmul.mubr.msk.bf16.gmra.mrb[24].mxu0 %vm112_vm0, %v76_v50  ;;  %525 = vmatpush1.bf16.msra.mxu1 %v1448_v56 }
  0x60   :  { %239 = vmatprep.mubr.bf16.mxu0 %v1579_v0  ;;  %526 = vmatprep.subr.bf16.mxu1 %v1449_v57  ;;  %v1458_v0 = vld [vmem:[#allocation6 + $0x10] ss:$8 sps:$4 sm:$0xff]  }
  0x61   :  { %894 = vmatpush1.bf16.msra.mxu0 %v1458_v0 }
  0x62   :  { %895 = vmatprep.subr.bf16.mxu0 %v1463_v1 }
  0x63   :  { %527 = vmatpush1.bf16.msra.mxu1 %v1451_v58 }
  0x64   :  { %528 = vmatprep.subr.bf16.mxu1 %v1452_v59 }
  0x65   :  { %896 = vmatpush1.bf16.msra.mxu0 %v1461_v2 }
  0x66   :  { %897 = vmatprep.subr.bf16.mxu0 %v1466_v3 }
  0x67   :  { %1330 = vmatmul.mubr.msk.bf16.gmra.mrb[28].mxu0 %vm112_vm0, %v77_v55  ;;  %529 = vmatpush1.bf16.msra.mxu1 %v1454_v60 }
  0x69   :  { %898 = vmatpush1.bf16.msra.mxu0 %v1464_v4 }
  0x6a   :  { %899 = vmatprep.subr.bf16.mxu0 %v1469_v5 }
  0x6d   :  { %900 = vmatpush1.bf16.msra.mxu0 %v1467_v6 }
  0x6e   :  { %901 = vmatprep.subr.bf16.mxu0 %v1472_v7 }
  0x71   :  { %902 = vmatpush1.bf16.msra.mxu0 %v1470_v8 }
  0x72   :  { %903 = vmatprep.subr.bf16.mxu0 %v1475_v9 }
  0x75   :  { %904 = vmatpush1.bf16.msra.mxu0 %v1473_v10 }
  0x76   :  { %905 = vmatprep.subr.bf16.mxu0 %v1478_v11 }
  0x79   :  { %906 = vmatpush1.bf16.msra.mxu0 %v1476_v12 }
  0x7a   :  { %907 = vmatprep.subr.bf16.mxu0 %v1481_v13 }
  0x7d   :  { %908 = vmatpush1.bf16.msra.mxu0 %v1479_v14 }
  0x7e   :  { %909 = vmatprep.subr.bf16.mxu0 %v1484_v15 }
  0x81   :  { %910 = vmatpush1.bf16.msra.mxu0 %v1482_v16 }
  0x82   :  { %911 = vmatprep.subr.bf16.mxu0 %v1487_v17 }
  0x85   :  { %912 = vmatpush1.bf16.msra.mxu0 %v1485_v18 }
  0x86   :  { %913 = vmatprep.subr.bf16.mxu0 %v1490_v19 }
  0x89   :  { %914 = vmatpush1.bf16.msra.mxu0 %v1488_v20 }
  0x8a   :  { %915 = vmatprep.subr.bf16.mxu0 %v1493_v21 }
  0x8d   :  { %916 = vmatpush1.bf16.msra.mxu0 %v1491_v23 }
 0x102   :  { %v171_v30 = vpop.f32.mrb[0].mxu0 }
 0x103   :  { %v173_v31 = vpop.f32.mrb[1].mxu0  ;;  %v1740_v34 = vadd.f32 %v171_v30, %v1734_v29 }
 0x104   :  { %v1737_v32 = vadd.f32 %v173_v31, %v1731_v28  ;;  %v175_v33 = vpop.f32.mrb[2].mxu0 }
 0x105   :  { %v1743_v35 = vadd.f32 %v175_v33, %v1734_v29  ;;  %v177_v36 = vpop.f32.mrb[3].mxu0  ;;  %v250_v41 = vmax.f32 %v1740_v34, 0.0 }
 0x106   :  { %v1746_v37 = vadd.f32 %v177_v36, %v1731_v28  ;;  %v251_v39 = vmax.f32 %v1737_v32, 0.0 }
 0x107   :  { %v252_v38 = vmax.f32 %v1743_v35, 0.0 }
 0x108   :  { %v253_v40 = vmax.f32 %v1746_v37, 0.0 }
 0x109   :  { %v282_v44 = vpack.c.bf16 %v252_v38, %v250_v41 }
 0x10a   :  { %v181_v42 = vpop.f32.mrb[4].mxu0  ;;  %v283_v43 = vpack.c.bf16 %v253_v40, %v251_v39 }
 0x10b   :  { %v183_v45 = vpop.f32.mrb[5].mxu0  ;;  %v1764_v48 = vadd.f32 %v181_v42, %v1734_v29 }
 0x10c   :  { %v1761_v46 = vadd.f32 %v183_v45, %v1731_v28  ;;  %v185_v47 = vpop.f32.mrb[6].mxu0  ;;  %530 = vmatprep.mubr.bf16.mxu1 %v283_v43 }
 0x10d   :  { %v1767_v49 = vadd.f32 %v185_v47, %v1734_v29  ;;  %v187_v50 = vpop.f32.mrb[7].mxu0  ;;  %531 = vmatmul.mubr.bf16.vlgmr.msra.gmra.mrb[0].mxu1 %v282_v44  ;;  %v254_v55 = vmax.f32 %v1764_v48, 0.0 }
 0x10e   :  { %v1770_v51 = vadd.f32 %v187_v50, %v1731_v28  ;;  %v255_v53 = vmax.f32 %v1761_v46, 0.0 }
 0x10f   :  { %v256_v52 = vmax.f32 %v1767_v49, 0.0 }
 0x110   :  { %v257_v54 = vmax.f32 %v1770_v51, 0.0 }
 0x111   :  { %v284_v58 = vpack.c.bf16 %v256_v52, %v254_v55 }
 0x112   :  { %v285_v56 = vpack.c.bf16 %v257_v54, %v255_v53  ;;  %v191_v57 = vpop.f32.mrb[8].mxu0 }
 0x113   :  { %v193_v59 = vpop.f32.mrb[9].mxu0  ;;  %v1788_v62 = vadd.f32 %v191_v57, %v1734_v29 }
 0x114   :  { %v1785_v60 = vadd.f32 %v193_v59, %v1731_v28  ;;  %v195_v61 = vpop.f32.mrb[10].mxu0  ;;  %540 = vmatprep.mubr.bf16.mxu1 %v285_v56 }
 0x115   :  { %v1791_v63 = vadd.f32 %v195_v61, %v1734_v29  ;;  %v197_v0 = vpop.f32.mrb[11].mxu0  ;;  %541 = vmatmul.mubr.bf16.gmra.mrb[4].mxu1 %v284_v58  ;;  %v258_v5 = vmax.f32 %v1788_v62, 0.0 }
 0x116   :  { %v1794_v1 = vadd.f32 %v197_v0, %v1731_v28  ;;  %v259_v3 = vmax.f32 %v1785_v60, 0.0 }
 0x117   :  { %v260_v2 = vmax.f32 %v1791_v63, 0.0 }
 0x118   :  { %v261_v4 = vmax.f32 %v1794_v1, 0.0 }
 0x119   :  { %v286_v8 = vpack.c.bf16 %v260_v2, %v258_v5 }
 0x11a   :  { %v287_v6 = vpack.c.bf16 %v261_v4, %v259_v3  ;;  %v201_v7 = vpop.f32.mrb[12].mxu0 }
 0x11b   :  { %v203_v9 = vpop.f32.mrb[13].mxu0  ;;  %v1812_v12 = vadd.f32 %v201_v7, %v1734_v29 }
 0x11c   :  { %v1809_v10 = vadd.f32 %v203_v9, %v1731_v28  ;;  %v205_v11 = vpop.f32.mrb[14].mxu0  ;;  %550 = vmatprep.mubr.bf16.mxu1 %v287_v6 }
 0x11d   :  { %v1815_v13 = vadd.f32 %v205_v11, %v1734_v29  ;;  %v207_v14 = vpop.f32.mrb[15].mxu0  ;;  %551 = vmatmul.mubr.bf16.gmra.mrb[8].mxu1 %v286_v8  ;;  %v2333_v19 = vmax.f32 %v1812_v12, 0.0 }
 0x11e   :  { %v1818_v15 = vadd.f32 %v207_v14, %v1731_v28  ;;  %v263_v17 = vmax.f32 %v1809_v10, 0.0 }
 0x11f   :  { %v264_v16 = vmax.f32 %v1815_v13, 0.0 }
 0x120   :  { %v2334_v18 = vmax.f32 %v1818_v15, 0.0 }
 0x121   :  { %v288_v23 = vpack.c.bf16 %v264_v16, %v2333_v19 }
 0x122   :  { %v289_v20 = vpack.c.bf16 %v2334_v18, %v263_v17  ;;  %v211_v21 = vpop.f32.mrb[16].mxu0 }
 0x123   :  { %v213_v25 = vpop.f32.mrb[17].mxu0  ;;  %v1836_v33 = vadd.f32 %v211_v21, %v1734_v29 }
 0x124   :  { %v1833_v30 = vadd.f32 %v213_v25, %v1731_v28  ;;  %v215_v31 = vpop.f32.mrb[18].mxu0  ;;  %560 = vmatprep.mubr.bf16.mxu1 %v289_v20 }
 0x125   :  { %v1839_v36 = vadd.f32 %v215_v31, %v1734_v29  ;;  %v217_v42 = vpop.f32.mrb[19].mxu0  ;;  %561 = vmatmul.mubr.bf16.gmra.mrb[12].mxu1 %v288_v23  ;;  %v2321_v50 = vmax.f32 %v1836_v33, 0.0 }
 0x126   :  { %v1842_v43 = vadd.f32 %v217_v42, %v1731_v28  ;;  %v2327_v45 = vmax.f32 %v1833_v30, 0.0 }
 0x127   :  { %v2332_v44 = vmax.f32 %v1839_v36, 0.0 }
 0x128   :  { %v2322_v47 = vmax.f32 %v1842_v43, 0.0 }
 0x129   :  { %v290_v58 = vpack.c.bf16 %v2332_v44, %v2321_v50 }
 0x12a   :  { %v291_v56 = vpack.c.bf16 %v2322_v47, %v2327_v45  ;;  %v221_v57 = vpop.f32.mrb[20].mxu0  ;;  %v1500_v45 = vld [vmem:[#allocation6 + $0xf0] ss:$8 sps:$4 sm:$0xff]  }
 0x12b   :  { %v223_v59 = vpop.f32.mrb[21].mxu0  ;;  %v1860_v6 = vadd.f32 %v221_v57, %v1734_v29 }
 0x12c   :  { %v1857_v61 = vadd.f32 %v223_v59, %v1731_v28  ;;  %v225_v0 = vpop.f32.mrb[22].mxu0  ;;  %570 = vmatprep.mubr.bf16.mxu1 %v291_v56 }
 0x12d   :  { %v1863_v7 = vadd.f32 %v225_v0, %v1734_v29  ;;  %v227_v8 = vpop.f32.mrb[23].mxu0  ;;  %571 = vmatmul.mubr.bf16.gmra.mrb[16].mxu1 %v290_v58  ;;  %v2317_v21 = vmax.f32 %v1860_v6, 0.0 }
 0x12e   :  { %v1866_v9 = vadd.f32 %v227_v8, %v1731_v28  ;;  %v2319_v14 = vmax.f32 %v1857_v61, 0.0 }
 0x12f   :  { %v2320_v11 = vmax.f32 %v1863_v7, 0.0 }
 0x130   :  { %v2318_v20 = vmax.f32 %v1866_v9, 0.0 }
 0x131   :  { %v292_v31 = vpack.c.bf16 %v2320_v11, %v2317_v21 }
 0x132   :  { %v293_v23 = vpack.c.bf16 %v2318_v20, %v2319_v14  ;;  %v231_v25 = vpop.f32.mrb[24].mxu0 }
 0x133   :  { %v233_v42 = vpop.f32.mrb[25].mxu0  ;;  %v1884_v58 = vadd.f32 %v231_v25, %v1734_v29 }
 0x134   :  { %v1881_v56 = vadd.f32 %v233_v42, %v1731_v28  ;;  %v235_v57 = vpop.f32.mrb[26].mxu0  ;;  %580 = vmatprep.mubr.bf16.mxu1 %v293_v23 }
 0x135   :  { %v1887_v59 = vadd.f32 %v235_v57, %v1734_v29  ;;  %v237_v0 = vpop.f32.mrb[27].mxu0  ;;  %581 = vmatmul.mubr.bf16.gmra.mrb[20].mxu1 %v292_v31  ;;  %v2325_v20 = vmax.f32 %v1884_v58, 0.0 }
 0x136   :  { %v1890_v8 = vadd.f32 %v237_v0, %v1731_v28  ;;  %v2324_v21 = vmax.f32 %v1881_v56, 0.0 }
 0x137   :  { %v2326_v22 = vmax.f32 %v1887_v59, 0.0 }
 0x138   :  { %v2323_v42 = vmax.f32 %v1890_v8, 0.0 }
 0x139   :  { %v294_v31 = vpack.c.bf16 %v2326_v22, %v2325_v20 }
 0x13a   :  { %v295_v23 = vpack.c.bf16 %v2323_v42, %v2324_v21  ;;  %v241_v25 = vpop.f32.mrb[28].mxu0 }
 0x13b   :  { %v243_v57 = vpop.f32.mrb[29].mxu0  ;;  %v1908_v11 = vadd.f32 %v241_v25, %v1734_v29  ;;  %v1497_v25 = vld [vmem:[#allocation6 + $0xe0] ss:$8 sps:$4 sm:$0xff]  }
 0x13c   :  { %v1905_v0 = vadd.f32 %v243_v57, %v1731_v28  ;;  %v245_v14 = vpop.f32.mrb[30].mxu0  ;;  %590 = vmatprep.mubr.bf16.mxu1 %v295_v23 }
 0x13d   :  { %v1911_v50 = vadd.f32 %v245_v14, %v1734_v29  ;;  %v247_v47 = vpop.f32.mrb[31].mxu0  ;;  %591 = vmatmul.mubr.bf16.gmra.mrb[24].mxu1 %v294_v31  ;;  %v2330_v22 = vmax.f32 %v1908_v11, 0.0  ;;  %v1499_v14 = vld [vmem:[#allocation6 + $0xe4] ss:$8 sps:$4 sm:$0xff]   ;;  %v1502_v31 = vld [vmem:[#allocation6 + $0xf4] ss:$8 sps:$4 sm:$0xff]  }
 0x13e   :  { %v1914_v42 = vadd.f32 %v247_v47, %v1731_v28  ;;  %v2329_v20 = vmax.f32 %v1905_v0, 0.0  ;;  %v1496_v28 = vld [vmem:[#allocation6 + $0xd4] ss:$8 sps:$4 sm:$0xff]   ;;  %v1494_v47 = vld [vmem:[#allocation6 + $0xd0] ss:$8 sps:$4 sm:$0xff]  }
 0x13f   :  { %v2331_v21 = vmax.f32 %v1911_v50, 0.0  ;;  %917 = vmatprep.subr.bf16.mxu0 %v1496_v28 }
 0x140   :  { %v2328_v57 = vmax.f32 %v1914_v42, 0.0  ;;  %918 = vmatpush1.bf16.msra.mxu0 %v1494_v47 }
 0x141   :  { %v296_v29 = vpack.c.bf16 %v2331_v21, %v2330_v22  ;;  %919 = vmatprep.subr.bf16.mxu0 %v1499_v14 }
 0x142   :  { %v297_v23 = vpack.c.bf16 %v2328_v57, %v2329_v20  ;;  %v332_v57 = vsub.s32 1, %v1717_v24 }
 0x144   :  { %600 = vmatprep.mubr.bf16.mxu1 %v297_v23  ;;  %920 = vmatpush1.bf16.msra.mxu0 %v1497_v25  ;;  %v1930_v20 = vrot.slane %v1728_v27, %v332_v57  ;;  %v1933_v23 = vrot.slane %v1723_v26, %v332_v57 }
 0x145   :  { %601 = vmatmul.mubr.bf16.gmra.mrb[28].mxu1 %v296_v29  ;;  %921 = vmatprep.subr.bf16.mxu0 %v1502_v31 }
 0x148   :  { %922 = vmatpush1.bf16.msra.mxu0 %v1500_v45 }
 0x1e0   :  { %v532_v29 = vpop.f32.mrb[0].mxu1 }
 0x1e1   :  { %v533_v28 = vadd.f32 %v532_v29, %v1930_v20  ;;  %v534_v47 = vpop.f32.mrb[1].mxu1 }
 0x1e2   :  { %v535_v22 = vadd.f32 %v534_v47, %v1933_v23  ;;  %v536_v14 = vpop.f32.mrb[2].mxu1 }
 0x1e3   :  { %v537_v25 = vadd.f32 %v536_v14, %v1930_v20  ;;  %v538_v21 = vpop.f32.mrb[3].mxu1  ;;  %v611_v44 = vmax.f32 %v533_v28, 0.0 }
 0x1e4   :  { %v612_v31 = vmax.f32 %v535_v22, 0.0  ;;  %v539_v45 = vadd.f32 %v538_v21, %v1933_v23 }
 0x1e5   :  { %v613_v19 = vmax.f32 %v537_v25, 0.0  ;;  %v1953_v22 = vadd.f32 %v611_v44, %v250_v41 }
 0x1e6   :  { %v614_v18 = vmax.f32 %v539_v45, 0.0  ;;  %v1945_v29 = vadd.f32 %v612_v31, %v251_v39 }
 0x1e7   :  { %v1941_v57 = vadd.f32 %v613_v19, %v252_v38 }
 0x1e8   :  { %v1949_v47 = vadd.f32 %v614_v18, %v253_v40  ;;  %v542_v14 = vpop.f32.mrb[4].mxu1 }
 0x1e9   :  { %v543_v21 = vadd.f32 %v542_v14, %v1930_v20  ;;  %v544_v28 = vpop.f32.mrb[5].mxu1  ;;  %v675_v39 = vpack.c.bf16 %v1941_v57, %v1953_v22 }
 0x1ea   :  { %v545_v35 = vadd.f32 %v544_v28, %v1933_v23  ;;  %v546_v38 = vpop.f32.mrb[6].mxu1  ;;  %v676_v32 = vpack.c.bf16 %v1949_v47, %v1945_v29 }
 0x1eb   :  { %v547_v37 = vadd.f32 %v546_v38, %v1930_v20  ;;  %v548_v40 = vpop.f32.mrb[7].mxu1  ;;  %v615_v41 = vmax.f32 %v543_v21, 0.0 }
 0x1ec   :  { %v616_v18 = vmax.f32 %v545_v35, 0.0  ;;  %v549_v34 = vadd.f32 %v548_v40, %v1933_v23  ;;  %923 = vmatprep.mubr.bf16.mxu0 %v676_v32 }
 0x1ed   :  { %v617_v19 = vmax.f32 %v547_v37, 0.0  ;;  %924 = vmatmul.mubr.bf16.vlgmr.msra.gmra.mrb[32].mxu0 %v675_v39  ;;  %v1977_v28 = vadd.f32 %v615_v41, %v254_v55 }
 0x1ee   :  { %v618_v44 = vmax.f32 %v549_v34, 0.0  ;;  %v1969_v31 = vadd.f32 %v616_v18, %v255_v53 }
 0x1ef   :  { %v1965_v25 = vadd.f32 %v617_v19, %v256_v52 }
 0x1f0   :  { %v1973_v45 = vadd.f32 %v618_v44, %v257_v54  ;;  %v552_v14 = vpop.f32.mrb[8].mxu1 }
 0x1f1   :  { %v553_v21 = vadd.f32 %v552_v14, %v1930_v20  ;;  %v554_v35 = vpop.f32.mrb[9].mxu1  ;;  %v677_v51 = vpack.c.bf16 %v1965_v25, %v1977_v28 }
 0x1f2   :  { %v555_v49 = vadd.f32 %v554_v35, %v1933_v23  ;;  %v556_v52 = vpop.f32.mrb[10].mxu1  ;;  %v678_v46 = vpack.c.bf16 %v1973_v45, %v1969_v31 }
 0x1f3   :  { %v557_v53 = vadd.f32 %v556_v52, %v1930_v20  ;;  %v558_v38 = vpop.f32.mrb[11].mxu1  ;;  %v619_v55 = vmax.f32 %v553_v21, 0.0 }
 0x1f4   :  { %v620_v54 = vmax.f32 %v555_v49, 0.0  ;;  %v559_v48 = vadd.f32 %v558_v38, %v1933_v23  ;;  %933 = vmatprep.mubr.bf16.mxu0 %v678_v46  ;;  %v2335_v46 = vmax.f32 %v1818_v15, 0.0 }
 0x1f5   :  { %v621_v32 = vmax.f32 %v557_v53, 0.0  ;;  %934 = vmatmul.mubr.bf16.gmra.mrb[36].mxu0 %v677_v51  ;;  %v2001_v41 = vadd.f32 %v619_v55, %v258_v5  ;;  %v2336_v51 = vmax.f32 %v1812_v12, 0.0 }
 0x1f6   :  { %v622_v39 = vmax.f32 %v559_v48, 0.0  ;;  %v1993_v40 = vadd.f32 %v620_v54, %v259_v3 }
 0x1f7   :  { %v1989_v37 = vadd.f32 %v621_v32, %v260_v2 }
 0x1f8   :  { %v1997_v18 = vadd.f32 %v622_v39, %v261_v4  ;;  %v562_v34 = vpop.f32.mrb[12].mxu1 }
 0x1f9   :  { %v563_v19 = vadd.f32 %v562_v34, %v1930_v20  ;;  %v564_v44 = vpop.f32.mrb[13].mxu1  ;;  %v679_v1 = vpack.c.bf16 %v1989_v37, %v2001_v41 }
 0x1fa   :  { %v565_v63 = vadd.f32 %v564_v44, %v1933_v23  ;;  %v566_v2 = vpop.f32.mrb[14].mxu1  ;;  %v680_v60 = vpack.c.bf16 %v1997_v18, %v1993_v40 }
 0x1fb   :  { %v567_v3 = vadd.f32 %v566_v2, %v1930_v20  ;;  %v568_v14 = vpop.f32.mrb[15].mxu1  ;;  %v623_v5 = vmax.f32 %v563_v19, 0.0 }
 0x1fc   :  { %v624_v4 = vmax.f32 %v565_v63, 0.0  ;;  %v569_v62 = vadd.f32 %v568_v14, %v1933_v23  ;;  %943 = vmatprep.mubr.bf16.mxu0 %v680_v60  ;;  %v2337_v63 = vmax.f32 %v1839_v36, 0.0  ;;  %v2338_v60 = vmax.f32 %v1833_v30, 0.0 }
 0x1fd   :  { %v625_v21 = vmax.f32 %v567_v3, 0.0  ;;  %944 = vmatmul.mubr.bf16.gmra.mrb[40].mxu0 %v679_v1  ;;  %v2025_v54 = vadd.f32 %v623_v5, %v2336_v51  ;;  %v2339_v14 = vmax.f32 %v1842_v43, 0.0 }
 0x1fe   :  { %v626_v35 = vmax.f32 %v569_v62, 0.0  ;;  %v2017_v52 = vadd.f32 %v624_v4, %v263_v17  ;;  %v2340_v62 = vmax.f32 %v1836_v33, 0.0 }
 0x1ff   :  { %v2013_v49 = vadd.f32 %v625_v21, %v264_v16 }
 0x200   :  { %v2021_v53 = vadd.f32 %v626_v35, %v2335_v46  ;;  %v572_v38 = vpop.f32.mrb[16].mxu1 }
 0x201   :  { %v573_v48 = vadd.f32 %v572_v38, %v1930_v20  ;;  %v574_v55 = vpop.f32.mrb[17].mxu1  ;;  %v681_v15 = vpack.c.bf16 %v2013_v49, %v2025_v54 }
 0x202   :  { %v575_v13 = vadd.f32 %v574_v55, %v1933_v23  ;;  %v576_v16 = vpop.f32.mrb[18].mxu1  ;;  %v682_v10 = vpack.c.bf16 %v2021_v53, %v2017_v52 }
 0x203   :  { %v577_v17 = vadd.f32 %v576_v16, %v1930_v20  ;;  %v578_v32 = vpop.f32.mrb[19].mxu1  ;;  %v627_v34 = vmax.f32 %v573_v48, 0.0 }
 0x204   :  { %v628_v39 = vmax.f32 %v575_v13, 0.0  ;;  %v579_v12 = vadd.f32 %v578_v32, %v1933_v23  ;;  %953 = vmatprep.mubr.bf16.mxu0 %v682_v10  ;;  %v2341_v10 = vmax.f32 %v1863_v7, 0.0  ;;  %v2342_v32 = vmax.f32 %v1857_v61, 0.0 }
 0x205   :  { %v629_v19 = vmax.f32 %v577_v17, 0.0  ;;  %954 = vmatmul.mubr.bf16.gmra.mrb[44].mxu0 %v681_v15  ;;  %v2049_v5 = vadd.f32 %v627_v34, %v2340_v62 }
 0x206   :  { %v630_v44 = vmax.f32 %v579_v12, 0.0  ;;  %v2041_v3 = vadd.f32 %v628_v39, %v2338_v60  ;;  %v2343_v39 = vmax.f32 %v1866_v9, 0.0 }
 0x207   :  { %v2037_v2 = vadd.f32 %v629_v19, %v2337_v63  ;;  %v2344_v19 = vmax.f32 %v1860_v6, 0.0 }
 0x208   :  { %v2045_v1 = vadd.f32 %v630_v44, %v2339_v14  ;;  %v582_v4 = vpop.f32.mrb[20].mxu1 }
 0x209   :  { %v583_v21 = vadd.f32 %v582_v4, %v1930_v20  ;;  %v584_v35 = vpop.f32.mrb[21].mxu1  ;;  %v683_v43 = vpack.c.bf16 %v2037_v2, %v2049_v5 }
 0x20a   :  { %v585_v36 = vadd.f32 %v584_v35, %v1933_v23  ;;  %v586_v46 = vpop.f32.mrb[22].mxu1  ;;  %v684_v30 = vpack.c.bf16 %v2045_v1, %v2041_v3 }
 0x20b   :  { %v587_v38 = vadd.f32 %v586_v46, %v1930_v20  ;;  %v588_v51 = vpop.f32.mrb[23].mxu1  ;;  %v631_v55 = vmax.f32 %v583_v21, 0.0 }
 0x20c   :  { %v632_v48 = vmax.f32 %v585_v36, 0.0  ;;  %v589_v33 = vadd.f32 %v588_v51, %v1933_v23  ;;  %963 = vmatprep.mubr.bf16.mxu0 %v684_v30  ;;  %v2345_v30 = vmax.f32 %v1887_v59, 0.0  ;;  %v2346_v51 = vmax.f32 %v1881_v56, 0.0 }
 0x20d   :  { %v633_v13 = vmax.f32 %v587_v38, 0.0  ;;  %964 = vmatmul.mubr.bf16.gmra.mrb[48].mxu0 %v683_v43  ;;  %v2073_v44 = vadd.f32 %v631_v55, %v2344_v19 }
 0x20e   :  { %v634_v16 = vmax.f32 %v589_v33, 0.0  ;;  %v2065_v15 = vadd.f32 %v632_v48, %v2342_v32  ;;  %v2347_v48 = vmax.f32 %v1890_v8, 0.0 }
 0x20f   :  { %v2061_v17 = vadd.f32 %v633_v13, %v2341_v10  ;;  %v2348_v13 = vmax.f32 %v1884_v58, 0.0 }
 0x210   :  { %v2069_v12 = vadd.f32 %v634_v16, %v2343_v39  ;;  %v592_v34 = vpop.f32.mrb[24].mxu1 }
 0x211   :  { %v593_v63 = vadd.f32 %v592_v34, %v1930_v20  ;;  %v594_v60 = vpop.f32.mrb[25].mxu1  ;;  %v685_v9 = vpack.c.bf16 %v2061_v17, %v2073_v44 }
 0x212   :  { %v595_v7 = vadd.f32 %v594_v60, %v1933_v23  ;;  %v596_v14 = vpop.f32.mrb[26].mxu1  ;;  %v686_v61 = vpack.c.bf16 %v2069_v12, %v2065_v15 }
 0x213   :  { %v597_v4 = vadd.f32 %v596_v14, %v1930_v20  ;;  %v598_v62 = vpop.f32.mrb[27].mxu1  ;;  %v635_v35 = vmax.f32 %v593_v63, 0.0 }
 0x214   :  { %v636_v21 = vmax.f32 %v595_v7, 0.0  ;;  %v599_v6 = vadd.f32 %v598_v62, %v1933_v23  ;;  %973 = vmatprep.mubr.bf16.mxu0 %v686_v61  ;;  %v2349_v61 = vmax.f32 %v1911_v50, 0.0  ;;  %v2350_v62 = vmax.f32 %v1905_v0, 0.0 }
 0x215   :  { %v637_v36 = vmax.f32 %v597_v4, 0.0  ;;  %974 = vmatmul.mubr.bf16.gmra.mrb[52].mxu0 %v685_v9  ;;  %v2097_v16 = vadd.f32 %v635_v35, %v2348_v13  ;;  %v725_v0 = vsub.s32 2, %v1717_v24 }
 0x216   :  { %v638_v46 = vmax.f32 %v599_v6, 0.0  ;;  %v2089_v43 = vadd.f32 %v636_v21, %v2346_v51  ;;  %v2352_v6 = vmax.f32 %v1908_v11, 0.0  ;;  %v1070_v11 = vsub.s32 3, %v1717_v24 }
 0x217   :  { %v2085_v38 = vadd.f32 %v637_v36, %v2345_v30  ;;  %v2129_v36 = vrot.slane %v1728_v27, %v725_v0 }
 0x218   :  { %v2093_v33 = vadd.f32 %v638_v46, %v2347_v48  ;;  %v602_v55 = vpop.f32.mrb[28].mxu1 }
 0x219   :  { %v603_v10 = vadd.f32 %v602_v55, %v1930_v20  ;;  %v604_v32 = vpop.f32.mrb[29].mxu1  ;;  %v687_v8 = vpack.c.bf16 %v2085_v38, %v2097_v16 }
 0x21a   :  { %v605_v59 = vadd.f32 %v604_v32, %v1933_v23  ;;  %v606_v39 = vpop.f32.mrb[30].mxu1  ;;  %v688_v56 = vpack.c.bf16 %v2093_v33, %v2089_v43 }
 0x21b   :  { %v607_v34 = vadd.f32 %v606_v39, %v1930_v20  ;;  %v608_v19 = vpop.f32.mrb[31].mxu1  ;;  %v639_v60 = vmax.f32 %v603_v10, 0.0  ;;  %v2351_v20 = vmax.f32 %v1914_v42, 0.0  ;;  %v2132_v42 = vrot.slane %v1723_v26, %v725_v0 }
 0x21c   :  { %v640_v63 = vmax.f32 %v605_v59, 0.0  ;;  %v609_v58 = vadd.f32 %v608_v19, %v1933_v23  ;;  %983 = vmatprep.mubr.bf16.mxu0 %v688_v56  ;;  %v2139_v59 = vrot.slane %v1728_v27, %v1070_v11 }
 0x21d   :  { %v641_v7 = vmax.f32 %v607_v34, 0.0  ;;  %984 = vmatmul.mubr.bf16.gmra.mrb[56].mxu0 %v687_v8  ;;  %v2121_v23 = vadd.f32 %v639_v60, %v2352_v6  ;;  %v2143_v34 = vrot.slane %v1723_v26, %v1070_v11 }
 0x21e   :  { %v642_v14 = vmax.f32 %v609_v58, 0.0  ;;  %v2113_v9 = vadd.f32 %v640_v63, %v2350_v62 }
 0x21f   :  { %v2109_v4 = vadd.f32 %v641_v7, %v2349_v61 }
 0x220   :  { %v2117_v21 = vadd.f32 %v642_v14, %v2351_v20 }
 0x221   :  { %v689_v50 = vpack.c.bf16 %v2109_v4, %v2121_v23 }
 0x222   :  { %v690_v35 = vpack.c.bf16 %v2117_v21, %v2113_v9 }
 0x224   :  { %993 = vmatprep.mubr.bf16.mxu0 %v690_v35 }
 0x225   :  { %994 = vmatmul.mubr.bf16.gmra.mrb[60].mxu0 %v689_v50 }
 0x2c0   :  { %v925_v46 = vpop.f32.mrb[32].mxu0 }
 0x2c1   :  { %v926_v30 = vadd.f32 %v925_v46, %v2129_v36  ;;  %v927_v51 = vpop.f32.mrb[33].mxu0 }
 0x2c2   :  { %v928_v48 = vadd.f32 %v927_v51, %v2132_v42  ;;  %v929_v55 = vpop.f32.mrb[34].mxu0 }
 0x2c3   :  { %v1004_v13 = vmax.f32 %v926_v30, 0.0  ;;  %v930_v10 = vadd.f32 %v929_v55, %v2129_v36  ;;  %v931_v32 = vpop.f32.mrb[35].mxu0 }
 0x2c4   :  { %v1005_v39 = vmax.f32 %v928_v48, 0.0  ;;  %v932_v56 = vadd.f32 %v931_v32, %v2132_v42 }
 0x2c5   :  { %v1036_v19 = vadd.f32 %v1004_v13, %v1953_v22  ;;  %v1006_v8 = vmax.f32 %v930_v10, 0.0 }
 0x2c6   :  { %v1037_v63 = vadd.f32 %v1005_v39, %v1945_v29  ;;  %v1007_v58 = vmax.f32 %v932_v56, 0.0 }
 0x2c7   :  { %v1038_v60 = vadd.f32 %v1006_v8, %v1941_v57  ;;  %v1076_v7 = vmul.f32 %v2139_v59, %v1036_v19 }
 0x2c8   :  { %v1039_v14 = vadd.f32 %v1007_v58, %v1949_v47  ;;  %v935_v27 = vpop.f32.mrb[36].mxu0  ;;  %v1077_v61 = vmul.f32 %v2143_v34, %v1037_v63 }
 0x2c9   :  { %v936_v62 = vadd.f32 %v935_v27, %v2129_v36  ;;  %v937_v20 = vpop.f32.mrb[37].mxu0  ;;  %v1078_v26 = vmul.f32 %v2139_v59, %v1038_v60 }
 0x2ca   :  { %v938_v22 = vadd.f32 %v937_v20, %v2132_v42  ;;  %v939_v6 = vpop.f32.mrb[38].mxu0  ;;  %v1108_v35 = vadd.f32 %v1077_v61, %v1076_v7  ;;  %v1079_v29 = vmul.f32 %v2143_v34, %v1039_v14 }
 0x2cb   :  { %v1008_v50 = vmax.f32 %v936_v62, 0.0  ;;  %v940_v57 = vadd.f32 %v939_v6, %v2129_v36  ;;  %v941_v0 = vpop.f32.mrb[39].mxu0 }
 0x2cc   :  { %v1009_v11 = vmax.f32 %v938_v22, 0.0  ;;  %v942_v47 = vadd.f32 %v941_v0, %v2132_v42  ;;  %1109 = vadd.xlane.f32.xlu0 %v1108_v35  ;;  %v1111_v46 = vadd.f32 %v1079_v29, %v1078_v26 }
 0x2cd   :  { %v1040_v30 = vadd.f32 %v1008_v50, %v1977_v28  ;;  %v1010_v51 = vmax.f32 %v940_v57, 0.0 }
 0x2ce   :  { %v1041_v48 = vadd.f32 %v1009_v11, %v1969_v31  ;;  %v1011_v55 = vmax.f32 %v942_v47, 0.0 }
 0x2cf   :  { %v1042_v13 = vadd.f32 %v1010_v51, %v1965_v25  ;;  %v1080_v10 = vmul.f32 %v2139_v59, %v1040_v30 }
 0x2d0   :  { %v1043_v32 = vadd.f32 %v1011_v55, %v1973_v45  ;;  %v945_v39 = vpop.f32.mrb[40].mxu0  ;;  %1112 = vadd.xlane.f32.xlu0 %v1111_v46  ;;  %v1081_v56 = vmul.f32 %v2143_v34, %v1041_v48 }
 0x2d1   :  { %v946_v19 = vadd.f32 %v945_v39, %v2129_v36  ;;  %v947_v8 = vpop.f32.mrb[41].mxu0  ;;  %v1082_v63 = vmul.f32 %v2139_v59, %v1042_v13 }
 0x2d2   :  { %v948_v28 = vadd.f32 %v947_v8, %v2132_v42  ;;  %v949_v58 = vpop.f32.mrb[42].mxu0  ;;  %v1114_v31 = vadd.f32 %v1081_v56, %v1080_v10  ;;  %v1083_v60 = vmul.f32 %v2143_v34, %v1043_v32 }
 0x2d3   :  { %v1012_v25 = vmax.f32 %v946_v19, 0.0  ;;  %v950_v7 = vadd.f32 %v949_v58, %v2129_v36  ;;  %v951_v14 = vpop.f32.mrb[43].mxu0 }
 0x2d4   :  { %v1013_v45 = vmax.f32 %v948_v28, 0.0  ;;  %v952_v27 = vadd.f32 %v951_v14, %v2132_v42  ;;  %1115 = vadd.xlane.f32.xlu1 %v1114_v31  ;;  %v1117_v61 = vadd.f32 %v1083_v60, %v1082_v63 }
 0x2d5   :  { %v1044_v62 = vadd.f32 %v1012_v25, %v2001_v41  ;;  %v1014_v20 = vmax.f32 %v950_v7, 0.0 }
 0x2d6   :  { %v1045_v26 = vadd.f32 %v1013_v45, %v1993_v40  ;;  %v1015_v22 = vmax.f32 %v952_v27, 0.0 }
 0x2d7   :  { %v1046_v6 = vadd.f32 %v1014_v20, %v1989_v37  ;;  %v1084_v35 = vmul.f32 %v2139_v59, %v1044_v62 }
 0x2d8   :  { %v1047_v29 = vadd.f32 %v1015_v22, %v1997_v18  ;;  %v955_v50 = vpop.f32.mrb[44].mxu0  ;;  %1118 = vadd.xlane.f32.xlu1 %v1117_v61  ;;  %v1085_v57 = vmul.f32 %v2143_v34, %v1045_v26 }
 0x2d9   :  { %v956_v0 = vadd.f32 %v955_v50, %v2129_v36  ;;  %v957_v11 = vpop.f32.mrb[45].mxu0  ;;  %v1086_v47 = vmul.f32 %v2139_v59, %v1046_v6 }
 0x2da   :  { %v958_v41 = vadd.f32 %v957_v11, %v2132_v42  ;;  %v959_v46 = vpop.f32.mrb[46].mxu0  ;;  %v1120_v40 = vadd.f32 %v1085_v57, %v1084_v35  ;;  %v1087_v30 = vmul.f32 %v2143_v34, %v1047_v29 }
 0x2db   :  { %v1016_v37 = vmax.f32 %v956_v0, 0.0  ;;  %v960_v51 = vadd.f32 %v959_v46, %v2129_v36  ;;  %v961_v48 = vpop.f32.mrb[47].mxu0 }
 0x2dc   :  { %v1017_v18 = vmax.f32 %v958_v41, 0.0  ;;  %v962_v55 = vadd.f32 %v961_v48, %v2132_v42  ;;  %1121 = vadd.xlane.f32.xlu0 %v1120_v40  ;;  %v1123_v13 = vadd.f32 %v1087_v30, %v1086_v47 }
 0x2dd   :  { %v1048_v10 = vadd.f32 %v1016_v37, %v2025_v54  ;;  %v1018_v32 = vmax.f32 %v960_v51, 0.0 }
 0x2de   :  { %v1049_v39 = vadd.f32 %v1017_v18, %v2017_v52  ;;  %v1019_v56 = vmax.f32 %v962_v55, 0.0  ;;  %1124 = vadd.xlane.f32.xlu1 %v1123_v13 }
 0x2df   :  { %v1050_v19 = vadd.f32 %v1018_v32, %v2013_v49  ;;  %v1088_v8 = vmul.f32 %v2139_v59, %v1048_v10 }
 0x2e0   :  { %v1051_v63 = vadd.f32 %v1019_v56, %v2021_v53  ;;  %v965_v28 = vpop.f32.mrb[48].mxu0  ;;  %v1089_v58 = vmul.f32 %v2143_v34, %v1049_v39 }
 0x2e1   :  { %v966_v31 = vadd.f32 %v965_v28, %v2129_v36  ;;  %v967_v60 = vpop.f32.mrb[49].mxu0  ;;  %v1090_v25 = vmul.f32 %v2139_v59, %v1050_v19 }
 0x2e2   :  { %v968_v54 = vadd.f32 %v967_v60, %v2132_v42  ;;  %v969_v7 = vpop.f32.mrb[50].mxu0  ;;  %v1126_v52 = vadd.f32 %v1089_v58, %v1088_v8  ;;  %v1091_v14 = vmul.f32 %v2143_v34, %v1051_v63 }
 0x2e3   :  { %v1020_v45 = vmax.f32 %v966_v31, 0.0  ;;  %v970_v49 = vadd.f32 %v969_v7, %v2129_v36  ;;  %v971_v27 = vpop.f32.mrb[51].mxu0 }
 0x2e4   :  { %v1021_v61 = vmax.f32 %v968_v54, 0.0  ;;  %v972_v53 = vadd.f32 %v971_v27, %v2132_v42  ;;  %1127 = vadd.xlane.f32.xlu0 %v1126_v52  ;;  %v1129_v62 = vadd.f32 %v1091_v14, %v1090_v25 }
 0x2e5   :  { %v1052_v20 = vadd.f32 %v1020_v45, %v2049_v5  ;;  %v1022_v26 = vmax.f32 %v970_v49, 0.0 }
 0x2e6   :  { %v1053_v22 = vadd.f32 %v1021_v61, %v2041_v3  ;;  %v1023_v6 = vmax.f32 %v972_v53, 0.0  ;;  %1130 = vadd.xlane.f32.xlu1 %v1129_v62 }
 0x2e7   :  { %v1054_v35 = vadd.f32 %v1022_v26, %v2037_v2  ;;  %v1092_v29 = vmul.f32 %v2139_v59, %v1052_v20 }
 0x2e8   :  { %v1055_v50 = vadd.f32 %v1023_v6, %v2045_v1  ;;  %v975_v57 = vpop.f32.mrb[52].mxu0  ;;  %v1093_v0 = vmul.f32 %v2143_v34, %v1053_v22 }
 0x2e9   :  { %v976_v11 = vadd.f32 %v975_v57, %v2129_v36  ;;  %v977_v47 = vpop.f32.mrb[53].mxu0  ;;  %v1094_v41 = vmul.f32 %v2139_v59, %v1054_v35 }
 0x2ea   :  { %v978_v5 = vadd.f32 %v977_v47, %v2132_v42  ;;  %v979_v46 = vpop.f32.mrb[54].mxu0  ;;  %v1132_v3 = vadd.f32 %v1093_v0, %v1092_v29  ;;  %v1095_v40 = vmul.f32 %v2143_v34, %v1055_v50 }
 0x2eb   :  { %v1024_v30 = vmax.f32 %v976_v11, 0.0  ;;  %v980_v2 = vadd.f32 %v979_v46, %v2129_v36  ;;  %v981_v37 = vpop.f32.mrb[55].mxu0 }
 0x2ec   :  { %v1025_v51 = vmax.f32 %v978_v5, 0.0  ;;  %v982_v1 = vadd.f32 %v981_v37, %v2132_v42  ;;  %1133 = vadd.xlane.f32.xlu0 %v1132_v3  ;;  %v1135_v48 = vadd.f32 %v1095_v40, %v1094_v41 }
 0x2ed   :  { %v1056_v18 = vadd.f32 %v1024_v30, %v2073_v44  ;;  %v1026_v55 = vmax.f32 %v980_v2, 0.0 }
 0x2ee   :  { %v1057_v13 = vadd.f32 %v1025_v51, %v2065_v15  ;;  %v1027_v10 = vmax.f32 %v982_v1, 0.0  ;;  %1136 = vadd.xlane.f32.xlu1 %v1135_v48  ;;  %v2353_v48 = vlaneseq }
 0x2ef   :  { %v1058_v32 = vadd.f32 %v1026_v55, %v2061_v17  ;;  %v1096_v39 = vmul.f32 %v2139_v59, %v1056_v18 }
 0x2f0   :  { %v1059_v56 = vadd.f32 %v1027_v10, %v2069_v12  ;;  %v985_v19 = vpop.f32.mrb[56].mxu0  ;;  %v1097_v8 = vmul.f32 %v2143_v34, %v1057_v13  ;;  %v2238_v18 = vand.u32 127, %v2353_v48 }
 0x2f1   :  { %v986_v63 = vadd.f32 %v985_v19, %v2129_v36  ;;  %v987_v28 = vpop.f32.mrb[57].mxu0  ;;  %v1098_v58 = vmul.f32 %v2139_v59, %v1058_v32 }
 0x2f2   :  { %v988_v44 = vadd.f32 %v987_v28, %v2132_v42  ;;  %v989_v31 = vpop.f32.mrb[58].mxu0  ;;  %v1138_v15 = vadd.f32 %v1097_v8, %v1096_v39  ;;  %v1099_v60 = vmul.f32 %v2143_v34, %v1059_v56  ;;  %v1210_v13 = vadd.s32 4294967272, %v2238_v18 }
 0x2f3   :  { %v1028_v25 = vmax.f32 %v986_v63, 0.0  ;;  %v990_v17 = vadd.f32 %v989_v31, %v2129_v36  ;;  %v991_v54 = vpop.f32.mrb[59].mxu0  ;;  %v1217_v10 = vadd.s32 4294967264, %v2238_v18  ;;  %v1194_v19 = vsub.s32 %v2238_v18, %v1717_v24 }
 0x2f4   :  { %v1029_v7 = vmax.f32 %v988_v44, 0.0  ;;  %v992_v12 = vadd.f32 %v991_v54, %v2132_v42  ;;  %1139 = vadd.xlane.f32.xlu0 %v1138_v15  ;;  %v1141_v52 = vadd.f32 %v1099_v60, %v1098_v58  ;;  %v1213_v58 = vsub.s32 %v1210_v13, %v1717_v24 }
 0x2f5   :  { %v1060_v14 = vadd.f32 %v1028_v25, %v2097_v16  ;;  %v1030_v45 = vmax.f32 %v990_v17, 0.0  ;;  %v1224_v31 = vadd.s32 4294967256, %v2238_v18  ;;  %v1220_v15 = vsub.s32 %v1217_v10, %v1717_v24 }
 0x2f6   :  { %v1061_v49 = vadd.f32 %v1029_v7, %v2089_v43  ;;  %v1031_v27 = vmax.f32 %v992_v12, 0.0  ;;  %1142 = vadd.xlane.f32.xlu1 %v1141_v52  ;;  %v1231_v17 = vadd.s32 4294967248, %v2238_v18  ;;  %v1238_v52 = vadd.s32 4294967240, %v2238_v18 }
 0x2f7   :  { %v1062_v61 = vadd.f32 %v1030_v45, %v2085_v38  ;;  %v1100_v53 = vmul.f32 %v2139_v59, %v1060_v14  ;;  %v1280_v13 = vadd.s32 4294967192, %v2238_v18 }
 0x2f8   :  { %v1063_v62 = vadd.f32 %v1031_v27, %v2093_v33  ;;  %v995_v20 = vpop.f32.mrb[60].mxu0  ;;  %v1101_v26 = vmul.f32 %v2143_v34, %v1061_v49  ;;  %v1227_v49 = vsub.s32 %v1224_v31, %v1717_v24 }
 0x2f9   :  { %v996_v22 = vadd.f32 %v995_v20, %v2129_v36  ;;  %v997_v6 = vpop.f32.mrb[61].mxu0  ;;  %v1102_v35 = vmul.f32 %v2139_v59, %v1062_v61 }
 0x2fa   :  { %v998_v16 = vadd.f32 %v997_v6, %v2132_v42  ;;  %v999_v29 = vpop.f32.mrb[62].mxu0  ;;  %v1144_v43 = vadd.f32 %v1101_v26, %v1100_v53  ;;  %v1103_v50 = vmul.f32 %v2143_v34, %v1063_v62  ;;  %v1234_v53 = vsub.s32 %v1231_v17, %v1717_v24 }
 0x2fb   :  { %v1032_v57 = vmax.f32 %v996_v22, 0.0  ;;  %v1000_v38 = vadd.f32 %v999_v29, %v2129_v36  ;;  %v1001_v0 = vpop.f32.mrb[63].mxu0  ;;  %v1245_v26 = vadd.s32 4294967232, %v2238_v18  ;;  %v1252_v29 = vadd.s32 4294967224, %v2238_v18 }
 0x2fc   :  { %v1033_v11 = vmax.f32 %v998_v16, 0.0  ;;  %v1002_v33 = vadd.f32 %v1001_v0, %v2132_v42  ;;  %1145 = vadd.xlane.f32.xlu0 %v1144_v43  ;;  %v1147_v47 = vadd.f32 %v1103_v50, %v1102_v35  ;;  %v1241_v16 = vsub.s32 %v1238_v52, %v1717_v24 }
 0x2fd   :  { %v1064_v41 = vadd.f32 %v1032_v57, %v2121_v23  ;;  %v1034_v5 = vmax.f32 %v1000_v38, 0.0  ;;  %v1259_v38 = vadd.s32 4294967216, %v2238_v18 }
 0x2fe   :  { %v1065_v46 = vadd.f32 %v1033_v11, %v2113_v9  ;;  %v1035_v3 = vmax.f32 %v1002_v33, 0.0  ;;  %1148 = vadd.xlane.f32.xlu1 %v1147_v47  ;;  %v1248_v33 = vsub.s32 %v1245_v26, %v1717_v24 }
 0x2ff   :  { %v1066_v40 = vadd.f32 %v1034_v5, %v2109_v4  ;;  %v1104_v30 = vmul.f32 %v2139_v59, %v1064_v41  ;;  %v1196_v4 = vadd.s32 4294967288, %v2238_v18 }
 0x300   :  { %v1067_v2 = vadd.f32 %v1035_v3, %v2117_v21  ;;  %v1105_v36 = vmul.f32 %v2143_v34, %v1065_v46  ;;  %v1203_v21 = vadd.s32 4294967280, %v2238_v18  ;;  %v1255_v46 = vsub.s32 %v1252_v29, %v1717_v24 }
 0x301   :  { %v1106_v37 = vmul.f32 %v2139_v59, %v1066_v40  ;;  %v2246_v59 = vstv %s2314_s5  ;;  %v1199_v32 = vsub.s32 %v1196_v4, %v1717_v24  ;;  %v1266_v3 = vadd.s32 4294967208, %v2238_v18  ;;  %s1580_s5 = smov [#allocation8]  }
 0x302   :  { %v1150_v42 = vadd.f32 %v1105_v36, %v1104_v30  ;;  %v1107_v51 = vmul.f32 %v2143_v34, %v1067_v2  ;;  %v1206_v8 = vsub.s32 %v1203_v21, %v1717_v24  ;;  %v1262_v36 = vsub.s32 %v1259_v38, %v1717_v24  ;;  %s1309_s13 = sshll.u32 %s1580_s5, 4  ;;  %s1310_s13 = int_to_ptr.vmem [resolvable:$true] %s1309_s13 }
 0x303   :  { %s1547_s14 = scalar_lea.vmem %s1310_s13, 16  ;;  %s1551_s15 = scalar_lea.vmem %s1310_s13, 32 }
 0x304   :  { %1151 = vadd.xlane.f32.xlu0 %v1150_v42  ;;  %v1153_v23 = vadd.f32 %v1107_v51, %v1106_v37  ;;  %p1548_p2 = scmp.ne.s32.totalorder %s1310_s13, %s1547_s14  ;;  %p1552_p3 = scmp.lt.s32.totalorder %s1310_s13, %s1310_s13 }
 0x305   :  { %p1553_p4 = scmp.lt.s32.totalorder %s1551_s15, %s1547_s14 }
 0x306   :  { %1154 = vadd.xlane.f32.xlu1 %v1153_v23 }
 0x307   :  { %p1554_p5 = por %p1553_p4, %p1552_p3 }
 0x309   :  { %p1555_p6 = pnand %p1554_p5, %p1548_p2 }
 0x359   :  { %v1110_v1 = vpop.xlane.xlu0 %1109 }
 0x35a   :  { %v1158_v28 = vadd.f32 %v2246_v59, %v1110_v1  ;;  %v1273_v1 = vadd.s32 4294967200, %v2238_v18 }
 0x35c   :  { %v1195_v14 = vrot.slane %v1158_v28, %v1194_v19  ;;  %v1287_v19 = vadd.s32 4294967184, %v2238_v18  ;;  %v1283_v28 = vsub.s32 %v1280_v13, %v1717_v24 }
 0x35d   :  { %v1113_v55 = vpop.xlane.xlu0 %1112 }
 0x35e   :  { %v1159_v39 = vadd.f32 %v2246_v59, %v1113_v55 }
 0x360   :  { %v1200_v54 = vrot.slane %v1159_v39, %v1199_v32  ;;  %v1276_v32 = vsub.s32 %v1273_v1, %v1717_v24 }
 0x361   :  { %v1116_v9 = vpop.xlane.xlu1 %1115 }
 0x362   :  { %v1160_v63 = vadd.f32 %v2246_v59, %v1116_v9  ;;  %v1202_v22 = vsel %vm1201_vm1, %v1200_v54, %v1195_v14  ;;  %v1269_v9 = vsub.s32 %v1266_v3, %v1717_v24 }
 0x364   :  { %v1207_v12 = vrot.slane %v1160_v63, %v1206_v8 }
 0x365   :  { %v1119_v34 = vpop.xlane.xlu1 %1118 }
 0x366   :  { %v1161_v44 = vadd.f32 %v2246_v59, %v1119_v34  ;;  %v1209_v35 = vsel %vm1208_vm2, %v1207_v12, %v1202_v22 }
 0x368   :  { %v1214_v45 = vrot.slane %v1161_v44, %v1213_v58 }
 0x369   :  { %v1122_v56 = vpop.xlane.xlu0 %1121 }
 0x36a   :  { %v1162_v60 = vadd.f32 %v2246_v59, %v1122_v56  ;;  %v1216_v43 = vsel %vm1215_vm3, %v1214_v45, %v1209_v35 }
 0x36b   :  { %v1125_v25 = vpop.xlane.xlu1 %1124 }
 0x36c   :  { %v1163_v27 = vadd.f32 %v2246_v59, %v1125_v25  ;;  %v1221_v61 = vrot.slane %v1162_v60, %v1220_v15  ;;  %v1294_v15 = vadd.s32 4294967176, %v2238_v18  ;;  %v1290_v60 = vsub.s32 %v1287_v19, %v1717_v24 }
 0x36e   :  { %v1228_v50 = vrot.slane %v1163_v27, %v1227_v49  ;;  %v1223_v0 = vsel %vm1222_vm4, %v1221_v61, %v1216_v43  ;;  %v1297_v52 = vsub.s32 %v1294_v15, %v1717_v24 }
 0x370   :  { %v1230_v40 = vsel %vm1229_vm5, %v1228_v50, %v1223_v0 }
 0x371   :  { %v1128_v7 = vpop.xlane.xlu0 %1127 }
 0x372   :  { %v1164_v62 = vadd.f32 %v2246_v59, %v1128_v7 }
 0x373   :  { %v1131_v20 = vpop.xlane.xlu1 %1130 }
 0x374   :  { %v1165_v57 = vadd.f32 %v2246_v59, %v1131_v20  ;;  %v1235_v11 = vrot.slane %v1164_v62, %v1234_v53 }
 0x376   :  { %v1242_v30 = vrot.slane %v1165_v57, %v1241_v16  ;;  %v1237_v37 = vsel %vm1236_vm6, %v1235_v11, %v1230_v40 }
 0x378   :  { %v1244_v48 = vsel %vm1243_vm7, %v1242_v30, %v1237_v37 }
 0x379   :  { %v1134_v6 = vpop.xlane.xlu0 %1133 }
 0x37a   :  { %v1166_v47 = vadd.f32 %v2246_v59, %v1134_v6 }
 0x37b   :  { %v1137_v41 = vpop.xlane.xlu1 %1136 }
 0x37c   :  { %v1167_v2 = vadd.f32 %v2246_v59, %v1137_v41  ;;  %v1249_v42 = vrot.slane %v1166_v47, %v1248_v33 }
 0x37e   :  { %v1256_v4 = vrot.slane %v1167_v2, %v1255_v46  ;;  %v1251_v34 = vsel %vm1250_vm8, %v1249_v42, %v1244_v48 }
 0x380   :  { %v1258_v8 = vsel %vm1257_vm9, %v1256_v4, %v1251_v34 }
 0x381   :  { %v1140_v5 = vpop.xlane.xlu0 %1139 }
 0x382   :  { %v1168_v51 = vadd.f32 %v2246_v59, %v1140_v5 }
 0x383   :  { %v1143_v23 = vpop.xlane.xlu1 %1142 }
 0x384   :  { %v1169_v55 = vadd.f32 %v2246_v59, %v1143_v23  ;;  %v1263_v10 = vrot.slane %v1168_v51, %v1262_v36 }
 0x386   :  { %v1270_v63 = vrot.slane %v1169_v55, %v1269_v9  ;;  %v1265_v44 = vsel %vm1264_vm10, %v1263_v10, %v1258_v8 }
 0x388   :  { %v1272_v25 = vsel %vm1271_vm11, %v1270_v63, %v1265_v44 }
 0x389   :  { %v1146_v21 = vpop.xlane.xlu0 %1145 }
 0x38a   :  { %v1170_v39 = vadd.f32 %v2246_v59, %v1146_v21 }
 0x38b   :  { %v1149_v56 = vpop.xlane.xlu1 %1148 }
 0x38c   :  { %v1171_v58 = vadd.f32 %v2246_v59, %v1149_v56  ;;  %v1277_v31 = vrot.slane %v1170_v39, %v1276_v32 }
 0x38e   :  { %v1284_v17 = vrot.slane %v1171_v58, %v1283_v28  ;;  %v1279_v7 = vsel %vm1278_vm12, %v1277_v31, %v1272_v25 }
 0x390   :  { %v1286_v18 = vsel %vm1285_vm13, %v1284_v17, %v1279_v7 }
 0x391   :  { %v1152_v54 = vpop.xlane.xlu0 %1151 }
 0x392   :  { %v1172_v12 = vadd.f32 %v2246_v59, %v1152_v54 }
 0x393   :  { %v1155_v14 = vpop.xlane.xlu1 %1154 }
 0x394   :  { %v1291_v45 = vrot.slane %v1172_v12, %v1290_v60  ;;  %v1173_v49 = vadd.f32 %v2246_v59, %v1155_v14 }
 0x396   :  { %v1298_v27 = vrot.slane %v1173_v49, %v1297_v52  ;;  %v1293_v61 = vsel %vm1292_vm14, %v1291_v45, %v1286_v18 }
 0x398   :  { %v1300_v53 = vsel %vm1299_vm15, %v1298_v27, %v1293_v61 }
 0x399   :  { %1302 = vst [vmem:[#allocation8] sm:$0x1] %v1300_v53 }
 0x39a   :  { %1558 = shalt.err (!%p1555_p6)
}
 0x39b   :  { %s1559_s18 = scalar_lea.hbm %s2315_s6, 16 }
 0x39c   :  { %p1560_p7 = scmp.ne.s32.totalorder %s2315_s6, %s1559_s18  ;;  %p1563_p8 = scmp.lt.u32.totalorder %s1559_s18, %s2315_s6 }
 0x39e   :  { %p1565_p9 = pnand %p1563_p8, %p1560_p7 }
 0x3a0   :  { %1568 = shalt.err (!%p1565_p9)
}
 0x3a1   :  { %1312 = dma.vmem_to_hbm [thread:$0]  %s1310_s13, 16, %s2315_s6, [#allocation5]  }
 0x3a2   :  { %1573 = dma.done.wait [#allocation5], 16  }
 0x3a3   :  { %1574 = vsyncadd [#allocation5], 4294967280 }
 0x3a4   :  { %1316 = vsyncpa [#allocation4], 1 }
 0x3a5   :  { %1317 = vsyncpa [#allocation7], 1 }
 0x3a6   :  { %1318 = vsyncpa [#allocation5], 1 }

</bundles_post_ra>
